<compile_context>
chip_gen: v6e
topology: v6e:2x2x1
jax: 0.10.0
libtpu: 0.0.40
codegen_flags: <defaults>
</compile_context>

<pallas_src>
import functools
import math

import jax
import jax.numpy as jnp
from jax.experimental import pallas as pl
from jax.experimental.pallas import tpu as pltpu

_HALF_LOG_2PI = 0.5 * math.log(2.0 * math.pi)
_LANES = 128


def _round_up(a, b):
    return ((a + b - 1) // b) * b


# ---------------------------------------------------------------------------
# Pallas kernels
# ---------------------------------------------------------------------------
def _bbb_conv_train_kernel(p_ref, wm_ref, wv_ref, noise_ref, out_ref):
    # p: (tm, Kp)   wm/wv: (Kp, Coutp)   noise/out: (tm, Coutp)
    p = p_ref[...]
    mean = jnp.dot(p, wm_ref[...], preferred_element_type=jnp.float32)
    # square on the VPU (free filler under MXU/DMA) instead of streaming a
    # second (M, K) patches array from HBM.
    var = jnp.dot(p * p, wv_ref[...], preferred_element_type=jnp.float32)
    out_ref[...] = mean + jnp.sqrt(1e-8 + var) * noise_ref[...]


def _bbb_conv_eval_kernel(p_ref, wm_ref, out_ref):
    # inference path: output == mean conv, no noise stream / sqrt-FMA at all.
    out_ref[...] = jnp.dot(p_ref[...], wm_ref[...],
                           preferred_element_type=jnp.float32)


def _kl_kernel(p_logvar, n_valid, tile_elems, mu_ref, std_ref, eps_ref, kl_ref):
    i = pl.program_id(0)

    @pl.when(i == 0)
    def _():
        kl_ref[0, 0] = jnp.float32(0.0)

    mu = mu_ref[...]
    std = std_ref[...]
    w = mu + std * eps_ref[...]                       # Normalout.sample()
    # Normalout.logpdf(w)  (variational posterior q)
    q_lp = (-_HALF_LOG_2PI) - jnp.log(std) - (w - mu) ** 2 / (2.0 * std * std)
    # FixedNormal(mu=0, logvar=p_logvar).logpdf(w)  (prior p)
    p_lp = (-_HALF_LOG_2PI) - 0.5 * p_logvar - (w * w) / (2.0 * math.exp(p_logvar))
    diff = q_lp - p_lp

    # mask out the zero/one padded tail so the reduction is exact
    rows, cols = mu.shape
    flat_idx = (i * tile_elems
                + jax.lax.broadcasted_iota(jnp.int32, (rows, cols), 0) * cols
                + jax.lax.broadcasted_iota(jnp.int32, (rows, cols), 1))
    diff = jnp.where(flat_idx < n_valid, diff, 0.0)
    kl_ref[0, 0] += jnp.sum(diff)


# ---------------------------------------------------------------------------
# Glue: im2col for conv3d (stride / padding / dilation), groups == 1
# TODO(synk): fuse the patch gather into the Pallas kernel (manual DMA of x
# rows) instead of materializing the 27x-larger (M, K) patches array in HBM.
# ---------------------------------------------------------------------------
def _im2col_3d(x, ksize, stride, padding, dilation):
    N, C, D, H, W = x.shape
    kd, kh, kw = ksize
    sd, sh, sw = stride
    pd, ph, pw = padding
    dd, dh, dw = dilation
    Do = (D + 2 * pd - dd * (kd - 1) - 1) // sd + 1
    Ho = (H + 2 * ph - dh * (kh - 1) - 1) // sh + 1
    Wo = (W + 2 * pw - dw * (kw - 1) - 1) // sw + 1
    xp = jnp.pad(x, ((0, 0), (0, 0), (pd, pd), (ph, ph), (pw, pw)))
    cols = []
    for i in range(kd):
        for j in range(kh):
            for k in range(kw):
                sl = xp[:, :,
                        i * dd: i * dd + sd * (Do - 1) + 1: sd,
                        j * dh: j * dh + sh * (Ho - 1) + 1: sh,
                        k * dw: k * dw + sw * (Wo - 1) + 1: sw]
                cols.append(sl)                        # (N, C, Do, Ho, Wo)
    patches = jnp.stack(cols, axis=2)                  # (N, C, Kk, Do, Ho, Wo)
    patches = patches.transpose(0, 3, 4, 5, 1, 2)      # (N, Do, Ho, Wo, C, Kk)
    patches = patches.reshape(N * Do * Ho * Wo, C * kd * kh * kw)
    return patches, (Do, Ho, Wo)


# ---------------------------------------------------------------------------
# KL term: gridded Pallas reduction with SMEM scalar accumulator
# ---------------------------------------------------------------------------
def _kl_divergence(conv_qw_mean, conv_qw_std, eps_w, p_logvar_init,
                   rows_per_block=256):
    mu = conv_qw_mean.reshape(-1)
    std = conv_qw_std.reshape(-1)
    eps = eps_w.reshape(-1)
    n_valid = mu.shape[0]

    rows = max(8, _round_up(-(-n_valid // _LANES), 8))
    rt = min(rows_per_block, rows)
    rows = _round_up(rows, rt)
    pad = rows * _LANES - n_valid

    mu2 = jnp.pad(mu, (0, pad)).reshape(rows, _LANES)
    # pad std with 1.0 so log(std) stays finite on padded (masked) entries
    std2 = jnp.pad(std, (0, pad), constant_values=1.0).reshape(rows, _LANES)
    eps2 = jnp.pad(eps, (0, pad)).reshape(rows, _LANES)

    kl = pl.pallas_call(
        functools.partial(_kl_kernel, float(p_logvar_init), n_valid, rt * _LANES),
        out_shape=jax.ShapeDtypeStruct((1, 1), jnp.float32),
        grid_spec=pltpu.PrefetchScalarGridSpec(
            num_scalar_prefetch=0,
            grid=(rows // rt,),
            in_specs=[pl.BlockSpec((rt, _LANES), lambda i: (i, 0))] * 3,
            out_specs=pl.BlockSpec((1, 1), lambda i: (0, 0),
                                   memory_space=pltpu.MemorySpace.SMEM),
        ),
        compiler_params=pltpu.CompilerParams(
            dimension_semantics=("arbitrary",)),
    )(mu2, std2, eps2)
    return kl[0, 0]


# ---------------------------------------------------------------------------
# Forward wrapper (semantics of BBBConv3d.convprobforward, groups == 1)
# ---------------------------------------------------------------------------
def bbb_conv3d_forward(x, qw_mean, conv_qw_mean, conv_qw_std, log_alpha,
                       noise_out, eps_w, stride, padding, dilation,
                       p_logvar_init=-3.0, training=True, tm=1024,
                       compute_dtype=None):
    N = x.shape[0]
    Cout, Cin, kd, kh, kw = qw_mean.shape
    ksize = (kd, kh, kw)
    K = Cin * kd * kh * kw
    Kp = _round_up(K, _LANES)          # contraction dim -> lane multiple
    Coutp = _round_up(Cout, _LANES)    # output dim -> lane-dense stores

    # qw_var = exp(log_alpha) * qw_mean**2  (parameter glue)
    qw_var = jnp.exp(log_alpha[0, 0]) * qw_mean ** 2

    patches, (Do, Ho, Wo) = _im2col_3d(x, ksize, stride, padding, dilation)
    M = patches.shape[0]

    if Kp != K:
        patches = jnp.pad(patches, ((0, 0), (0, Kp - K)))   # zero pad: exact
    w_mean_t = jnp.pad(qw_mean.reshape(Cout, K).T,
                       ((0, Kp - K), (0, Coutp - Cout)))     # (Kp, Coutp)
    w_var_t = jnp.pad(qw_var.reshape(Cout, K).T,
                      ((0, Kp - K), (0, Coutp - Cout)))

    if compute_dtype is not None:
        # optional bf16 input streams for v6e/v7x; f32 MXU accumulation and
        # f32 epilogue are kept inside the kernel.
        patches = patches.astype(compute_dtype)
        w_mean_t = w_mean_t.astype(compute_dtype)
        w_var_t = w_var_t.astype(compute_dtype)

    # M tiling: big tiles for HBM roofline, but keep >=2 grid blocks so both
    # v7x TensorCores get work.  No jnp.pad of M: ragged last block is fine
    # because output rows depend only on their own patch row.
    tm = min(tm, _round_up(M, 8))
    if pl.cdiv(M, tm) < 2 and M > 8:
        tm = _round_up(pl.cdiv(M, 2), 8)
    grid_m = pl.cdiv(M, tm)

    cparams = pltpu.CompilerParams(
        dimension_semantics=("parallel",),
        vmem_limit_bytes=32 * 1024 * 1024)

    if training:
        noise2d = noise_out.transpose(0, 2, 3, 4, 1).reshape(M, Cout)
        noise2d = jnp.pad(noise2d, ((0, 0), (0, Coutp - Cout)))
        out2d = pl.pallas_call(
            _bbb_conv_train_kernel,
            out_shape=jax.ShapeDtypeStruct((M, Coutp), jnp.float32),
            grid_spec=pltpu.PrefetchScalarGridSpec(
                num_scalar_prefetch=0,
                grid=(grid_m,),
                in_specs=[
                    pl.BlockSpec((tm, Kp), lambda i: (i, 0)),
                    pl.BlockSpec((Kp, Coutp), lambda i: (0, 0)),
                    pl.BlockSpec((Kp, Coutp), lambda i: (0, 0)),
                    pl.BlockSpec((tm, Coutp), lambda i: (i, 0)),
                ],
                out_specs=pl.BlockSpec((tm, Coutp), lambda i: (i, 0)),
            ),
            compiler_params=cparams,
        )(patches, w_mean_t, w_var_t, noise2d)
    else:
        out2d = pl.pallas_call(
            _bbb_conv_eval_kernel,
            out_shape=jax.ShapeDtypeStruct((M, Coutp), jnp.float32),
            grid_spec=pltpu.PrefetchScalarGridSpec(
                num_scalar_prefetch=0,
                grid=(grid_m,),
                in_specs=[
                    pl.BlockSpec((tm, Kp), lambda i: (i, 0)),
                    pl.BlockSpec((Kp, Coutp), lambda i: (0, 0)),
                ],
                out_specs=pl.BlockSpec((tm, Coutp), lambda i: (i, 0)),
            ),
            compiler_params=cparams,
        )(patches, w_mean_t)

    out2d = out2d[:, :Cout]
    output = out2d.reshape(N, Do, Ho, Wo, Cout).transpose(0, 4, 1, 2, 3)

    # KL = sum( q.logpdf(w_sample) - p.logpdf(w_sample) ) over all weights
    kl = _kl_divergence(conv_qw_mean, conv_qw_std, eps_w, p_logvar_init)
    return output, kl


# ---------------------------------------------------------------------------
if __name__ == "__main__":
    N, Cin, Cout = 2, 4, 8
    D = H = W = 8
    ksize = (3, 3, 3)
    stride = (1, 1, 1)
    padding = (1, 1, 1)
    dilation = (1, 1, 1)
    p_logvar_init = -3.0
    q_logvar_init = -5.0

    kd, kh, kw = ksize
    n_fan = Cin * kd * kh * kw
    stdv = 1.0 / math.sqrt(n_fan)
    wshape = (Cout, Cin, kd, kh, kw)

    key = jax.random.PRNGKey(0)
    k1, k2, k3, k4, k5, k6, k7 = jax.random.split(key, 7)
    qw_mean = jax.random.uniform(k1, wshape, jnp.float32, -stdv, stdv)
    conv_qw_mean = jax.random.uniform(k2, wshape, jnp.float32, -stdv, stdv)
    # TODO(synk): original init (U(-stdv,stdv) + q_logvar_init) gives a negative
    # std -> log(std)=NaN in the KL term; use a positive deterministic std of
    # comparable scale instead so the computation stays finite.
    conv_qw_std = jax.random.uniform(k3, wshape, jnp.float32, 0.0, stdv) + math.exp(q_logvar_init)
    log_alpha = jax.random.uniform(k4, (1, 1), jnp.float32, -stdv, stdv)

    x = jax.random.normal(k5, (N, Cin, D, H, W), jnp.float32)

    Do = (D + 2 * padding[0] - dilation[0] * (kd - 1) - 1) // stride[0] + 1
    Ho = (H + 2 * padding[1] - dilation[1] * (kh - 1) - 1) // stride[1] + 1
    Wo = (W + 2 * padding[2] - dilation[2] * (kw - 1) - 1) // stride[2] + 1
    noise_out = jax.random.normal(k6, (N, Cout, Do, Ho, Wo), jnp.float32)
    eps_w = jax.random.normal(k7, wshape, jnp.float32)

    output, kl = bbb_conv3d_forward(
        x, qw_mean, conv_qw_mean, conv_qw_std, log_alpha,
        noise_out, eps_w, stride, padding, dilation,
        p_logvar_init=p_logvar_init, training=True)
    output = jax.block_until_ready(output)
    kl = jax.block_until_ready(kl)

    # --- reference check (XLA conv + plain JAX) ---
    dn = jax.lax.conv_dimension_numbers(x.shape, wshape, ("NCDHW", "OIDHW", "NCDHW"))
    qw_var = jnp.exp(log_alpha[0, 0]) * qw_mean ** 2
    pads = [(p, p) for p in padding]
    mean_ref = jax.lax.conv_general_dilated(
        x, qw_mean, stride, pads, rhs_dilation=dilation, dimension_numbers=dn,
        precision=jax.lax.Precision.HIGHEST)
    var_ref = jax.lax.conv_general_dilated(
        x * x, qw_var, stride, pads, rhs_dilation=dilation, dimension_numbers=dn,
        precision=jax.lax.Precision.HIGHEST)
    out_ref = mean_ref + jnp.sqrt(1e-8 + var_ref) * noise_out

    w_s = conv_qw_mean + conv_qw_std * eps_w
    c = -0.5 * math.log(2.0 * math.pi)
    q_lp = c - jnp.log(conv_qw_std) - (w_s - conv_qw_mean) ** 2 / (2.0 * conv_qw_std ** 2)
    p_lp = c - 0.5 * p_logvar_init - w_s ** 2 / (2.0 * math.exp(p_logvar_init))
    kl_ref = jnp.sum(q_lp - p_lp)

    assert output.shape == (N, Cout, Do, Ho, Wo)
    assert jnp.allclose(output, out_ref, atol=2e-2, rtol=2e-2), "conv output mismatch"
    assert jnp.allclose(kl, kl_ref, atol=1e-2, rtol=1e-3), "KL mismatch"

    print("KERNEL_OK")
</pallas_src>

<mosaic_0001>
module attributes {stable_mosaic.version = 11 : i64} {
  func.func @_bbb_conv_train_kernel(%arg0: i32, %arg1: memref<512x128xf32, #tpu.memory_space<vmem>>, %arg2: memref<128x128xf32, #tpu.memory_space<vmem>>, %arg3: memref<128x128xf32, #tpu.memory_space<vmem>>, %arg4: memref<512x128xf32, #tpu.memory_space<vmem>>, %arg5: memref<512x128xf32, #tpu.memory_space<vmem>>) attributes {dimension_semantics = [#tpu.dimension_semantics<parallel>], iteration_bounds = array<i64: 2>, scalar_prefetch = 0 : i64, scratch_operands = 0 : i64, tpu.core_type = #tpu.core_type<tc>, window_params = [{transform_indices = @transform_0, window_bounds = array<i64: 512, 128>}, {pipeline_mode = #tpu.pipeline_mode<synchronous>, transform_indices = @transform_1, window_bounds = array<i64: 128, 128>}, {pipeline_mode = #tpu.pipeline_mode<synchronous>, transform_indices = @transform_2, window_bounds = array<i64: 128, 128>}, {transform_indices = @transform_3, window_bounds = array<i64: 512, 128>}, {transform_indices = @transform_4, window_bounds = array<i64: 512, 128>}]} {
    %c0 = arith.constant 0 : index
    %c0_0 = arith.constant 0 : index
    %0 = vector.load %arg1[%c0, %c0_0] : memref<512x128xf32, #tpu.memory_space<vmem>>, vector<512x128xf32>
    %c0_1 = arith.constant 0 : index
    %c0_2 = arith.constant 0 : index
    %1 = vector.load %arg2[%c0_1, %c0_2] : memref<128x128xf32, #tpu.memory_space<vmem>>, vector<128x128xf32>
    %cst = arith.constant dense<0.000000e+00> : vector<512x128xf32>
    %2 = tpu.matmul %0, %1, %cst {dimension_numbers = #tpu.dot_dimension_numbers<[1], [0], [0], [1], [0, 0, 1, 1], [], []>} : vector<512x128xf32>, vector<128x128xf32>, vector<512x128xf32> -> vector<512x128xf32>
    %3 = arith.mulf %0, %0 : vector<512x128xf32>
    %c0_3 = arith.constant 0 : index
    %c0_4 = arith.constant 0 : index
    %4 = vector.load %arg3[%c0_3, %c0_4] : memref<128x128xf32, #tpu.memory_space<vmem>>, vector<128x128xf32>
    %cst_5 = arith.constant dense<0.000000e+00> : vector<512x128xf32>
    %5 = tpu.matmul %3, %4, %cst_5 {dimension_numbers = #tpu.dot_dimension_numbers<[1], [0], [0], [1], [0, 0, 1, 1], [], []>} : vector<512x128xf32>, vector<128x128xf32>, vector<512x128xf32> -> vector<512x128xf32>
    %cst_6 = arith.constant 9.99999993E-9 : f32
    %6 = vector.broadcast %cst_6 : f32 to vector<512x128xf32>
    %7 = arith.addf %6, %5 : vector<512x128xf32>
    %8 = math.sqrt %7 : vector<512x128xf32>
    %c0_7 = arith.constant 0 : index
    %c0_8 = arith.constant 0 : index
    %9 = vector.load %arg4[%c0_7, %c0_8] : memref<512x128xf32, #tpu.memory_space<vmem>>, vector<512x128xf32>
    %10 = arith.mulf %8, %9 : vector<512x128xf32>
    %11 = arith.addf %2, %10 : vector<512x128xf32>
    %c0_9 = arith.constant 0 : index
    %c0_10 = arith.constant 0 : index
    %12 = vector.load %arg5[%c0_9, %c0_10] : memref<512x128xf32, #tpu.memory_space<vmem>>, vector<512x128xf32>
    tpu.vector_store %arg5[%c0_9, %c0_10], %11 {strides = array<i32>} : memref<512x128xf32, #tpu.memory_space<vmem>>, vector<512x128xf32>,
    return
  }
  func.func @transform_0(%arg0: i32) -> (i32, i32) {
    %c0_i32 = arith.constant 0 : i32
    %c0_i32_0 = arith.constant 0 : i32
    return %arg0, %c0_i32 : i32, i32
  }
  func.func @transform_1(%arg0: i32) -> (i32, i32) {
    %c0_i32 = arith.constant 0 : i32
    %c0_i32_0 = arith.constant 0 : i32
    %c0_i32_1 = arith.constant 0 : i32
    return %c0_i32, %c0_i32_0 : i32, i32
  }
  func.func @transform_2(%arg0: i32) -> (i32, i32) {
    %c0_i32 = arith.constant 0 : i32
    %c0_i32_0 = arith.constant 0 : i32
    %c0_i32_1 = arith.constant 0 : i32
    return %c0_i32, %c0_i32_0 : i32, i32
  }
  func.func @transform_3(%arg0: i32) -> (i32, i32) {
    %c0_i32 = arith.constant 0 : i32
    %c0_i32_0 = arith.constant 0 : i32
    return %arg0, %c0_i32 : i32, i32
  }
  func.func @transform_4(%arg0: i32) -> (i32, i32) {
    %c0_i32 = arith.constant 0 : i32
    %c0_i32_0 = arith.constant 0 : i32
    return %arg0, %c0_i32 : i32, i32
  }
}

</mosaic_0001>

<bundles_post_ra>
// kernel: tpu_custom_call.1
= control target key start
LH: loop header
LB: loop body
LE: loop exit
PB: predicated region body
PF: predicated region fallthrough
CT: control target
= control target key end

     0   :  { %s4168_s0 = inlined_call_operand.hbm [shape: f32[1024,128], index: 0, kind: input, shape index: {}]   ;;  %s4169_s1 = inlined_call_operand.hbm [shape: f32[128,128], index: 1, kind: input, shape index: {}]   ;;  %s4170_s2 = inlined_call_operand.hbm [shape: f32[128,128], index: 2, kind: input, shape index: {}]   ;;  %s4171_s3 = inlined_call_operand.hbm [shape: f32[1024,128], index: 3, kind: input, shape index: {}]   ;;  %s4172_s4 = inlined_call_operand.hbm [shape: f32[1024,128], index: 4, kind: output, shape index: {}]  }
   0x1   :  { %4181 = sst [smem:[#allocation15_spill]] %s4168_s0 }
   0x2   :  { %4182 = sst [smem:[#allocation16_spill]] %s4169_s1 }
   0x3   :  { %4183 = sst [smem:[#allocation17_spill]] %s4170_s2 }
   0x4   :  { %9 = vsyncpa [#allocation3], 0 }
   0x5   :  { %11 = vsyncpa [#allocation3 + $0x1], 0 }
   0x6   :  { %12 = vsyncpa [#allocation6], 0 }
   0x7   :  { %13 = vsyncpa [#allocation9], 0 }
   0x8   :  { %15 = vsyncpa [#allocation9 + $0x1], 0 }
   0x9   :  { %16 = vsyncpa [#allocation4], 0 }
   0xa   :  { %18 = vsyncpa [#allocation4 + $0x1], 0  ;;  %s2848_s15 = smov 0   ;;  %s2850_s16 = smov 0  }
   0xb   :  { %s2852_s17 = smov 0   ;;  %s2854_s18 = smov 0  }
   0xc LB: > { %s2869_s19 = sadd.s32 4294967295, %s2812_s18   ;;  %s1987_s20 = sadd.s32 4294967294, %s2812_s18   ;;  %s2812_s18 = sphi %s2854_s18, %s4205_s18   ;;  %s2808_s17 = sphi %s2852_s17, %s4204_s17   ;;  %s2804_s16 = sphi %s2850_s16, %s4203_s16   ;;  %s2800_s15 = sphi %s2848_s15, %s4202_s15  }
   0xd   : > { %p44_p0 = scmp.ne.s32.totalorder %s2804_s16, %s2800_s15  ;;  %p4178_p1 = scmp.eq.s32.totalorder %s2869_s19, 0 }
   0xe   : > { %p136_p2 = scmp.eq.s32.totalorder %s2869_s19, 1  ;;  %p142_p3 = scmp.eq.s32.totalorder %s1987_s20, 1 }
   0xf   : > { %p2878_p4 = por %p4178_p1, %p44_p0  ;;  %p1988_p5 = scmp.ge.s32.totalorder %s2812_s18, 1 }
  0x10   : > { %p2883_p6 = por %p142_p3, %p44_p0  ;;  %p149_p7 = scmp.lt.s32.totalorder %s2812_s18, 3 }
  0x11   : > { %s4184_s21 = scalar_select %p2878_p4, 1, 0 }
  0x12   : > { %s4185_s22 = scalar_select %p2883_p6, 1, 0 }
  0x13   : > { %p2888_p8 = pnand %p1988_p5, %p149_p7  ;;  %s2814_s24 = smov [#allocation5]  }
  0x14   : > { %s161_s25 = sshll.u32 %s2814_s24, 4  ;;  %s2815_s27 = smov [#allocation7]   ;;  %s162_s25 = int_to_ptr.vmem [resolvable:$true] %s161_s25 }
  0x15   : > { %p2442_p9 = pneg %p2888_p8  ;;  %s174_s28 = sshll.u32 %s2815_s27, 4  ;;  %s175_s28 = int_to_ptr.vmem [resolvable:$true] %s174_s28 }
  0x16   : > { %s2643_s29 = scalar_lea.vmem %s162_s25, 2048  ;;  %p2651_p5 = scmp.lt.s32.totalorder %s162_s25, %s162_s25 }
  0x17   : > { %p2897_p11 = pnand %p2442_p9, %p4178_p1  ;;  %p2644_p13 = scmp.ne.s32.totalorder %s162_s25, %s2643_s29 }
  0x18   : > { %p2652_p7 = scmp.lt.s32.totalorder %s2643_s29, %s2643_s29 }
  0x19   : > { %p2634_p12 = pneg %p2897_p11 }
  0x1a   : > { %p2653_p10 = por %p2652_p7, %p2651_p5 }
  0x1b   : > { %p2646_p0 = pnand %p2644_p13, %p2634_p12 }
  0x1d   : > { %p2647_p3 = pneg %p2646_p0 }
  0x1f   : > { %p2654_p9 = pnand %p2653_p10, %p2647_p3 }
  0x21   : > { %2657 = shalt.err (!%p2654_p9)
}
  0x22   : > { %s4174_s30 = smov 128   ;;  %s4176_s5 = smov 8  }
  0x23   : > { %s4188_s1 = sld [smem:[#allocation16_spill]]  ;;  %s2669_s8 = scalar_lea.vmem %s175_s28, 2048 }
  0x24   : > { %p2670_p13 = scmp.ne.s32.totalorder %s175_s28, %s2669_s8  ;;  %p2677_p10 = scmp.lt.s32.totalorder %s175_s28, %s175_s28 }
  0x25   : > { %p2678_p3 = scmp.lt.s32.totalorder %s2669_s8, %s2669_s8 }
  0x26   : > { %p2672_p0 = pnand %p2670_p13, %p2634_p12 }
  0x27   : > { %p2679_p7 = por %p2678_p3, %p2677_p10 }
  0x28   : > { %p2673_p5 = pneg %p2672_p0 }
  0x29   : > { %2445 = dma.hbm_to_vmem [thread:$0]  (!%p2897_p11), %s4188_s1, 2048, %s162_s25, [#allocation6], %s4174_s30, %s4174_s30, %s4176_s5  }
  0x2a   : > { %p2680_p9 = pnand %p2679_p7, %p2673_p5 }
  0x2c   : > { %2683 = shalt.err (!%p2680_p9)
}
  0x2d   : > { %s4189_s2 = sld [smem:[#allocation17_spill]]  ;;  %s2926_s11 = sadd.s32 1, %s2812_s18  }
  0x2e   : > { %s31_s12 = sadd.s32 1, %s2808_s17  ;;  %s28_s13 = ssub.s32 %s2812_s18, %s2926_s11 }
  0x2f   : > { %p38_p12 = scmp.ne.s32.totalorder %s2808_s17, %s2804_s16  ;;  %p29_p13 = scmp.eq.s32.totalorder %s28_s13, 0 }
  0x30   : > { %p39_p0 = scmp.eq.s32.totalorder %s2812_s18, 0  ;;  %p2462_p10 = scmp.lt.s32.totalorder %s2812_s18, 2 }
  0x31   : > { %p2936_p5 = por %p136_p2, %p38_p12  ;;  %s2945_s24 = sand.u32 1, %s2808_s17  }
  0x32   : > { %s2942_s20 = scalar_select %p29_p13, %s2808_s17, %s31_s12  }
  0x33   : > { %2448 = dma.hbm_to_vmem [thread:$0]  (!%p2897_p11), %s4189_s2, 2048, %s175_s28, [#allocation6], %s4174_s30, %s4174_s30, %s4176_s5  }
  0x34   : > { %s4190_s14 = scalar_select %p2936_p5, 1, 0 }
  0x35   : > { %p40_p3 = por %p39_p0, %p38_p12  ;;  %s4173_s25 = sshll.u32 %s2945_s24, 9 }
  0x36   : > { %s2009_s26 = sshll.u32 %s2812_s18, 13  ;;  %s4191_s0 = sld [smem:[#allocation15_spill]] }
  0x37   : > { %s192_s6 = scalar_lea.vmem [#allocation2], %s4173_s25  ;;  %p2958_p2 = pnand %p2462_p10, %p40_p3 }
  0x38   : > { %s199_s7 = sshll.u32 %s192_s6, 4  ;;  %s2965_s12 = scalar_lea.hbm %s4171_s3, %s2009_s26  ;;  %s2956_s7 = int_to_ptr.vmem [resolvable:$true] %s199_s7 }
  0x39   : > { %s189_s13 = scalar_lea.sflag [#allocation3], %s2945_s24  ;;  %p2686_p7 = pneg %p2958_p2 }
  0x3c   : > { %s2952_s29 = scalar_lea.hbm %s4191_s0, %s2009_s26  ;;  %s2689_s25 = scalar_lea.hbm %s4191_s0, 16384 }
  0x3d   : > { %s2684_s27 = scalar_lea.hbm %s2952_s29, 8192  ;;  %p2690_p13 = scmp.lt.s32.totalorder %s2952_s29, %s4191_s0 }
  0x3e   : > { %p2685_p11 = scmp.ne.s32.totalorder %s2952_s29, %s2684_s27  ;;  %p2691_p0 = scmp.lt.s32.totalorder %s2689_s25, %s2684_s27 }
  0x40   : > { %p2687_p9 = pnand %p2686_p7, %p2685_p11  ;;  %p2692_p10 = por %p2691_p0, %p2690_p13 }
  0x42   : > { %p2688_p12 = pneg %p2687_p9 }
  0x44   : > { %p2693_p3 = pnand %p2692_p10, %p2688_p12 }
  0x46   : > { %2696 = shalt.err (!%p2693_p3)
}
  0x47   : > { %s2697_s26 = scalar_lea.vmem %s2956_s7, 8192  ;;  %s2818_s9 = smov [#allocation2]  }
  0x48   : > { %p2698_p1 = scmp.ne.s32.totalorder %s2956_s7, %s2697_s26  ;;  %s2702_s10 = sshll.u32 %s2818_s9, 4  ;;  %s2703_s10 = int_to_ptr.vmem [resolvable:$false] %s2702_s10 }
  0x49   : > { %s2704_s28 = scalar_lea.vmem %s2703_s10, 16384  ;;  %p2705_p6 = scmp.lt.s32.totalorder %s2956_s7, %s2703_s10 }
  0x4a   : > { %p2700_p11 = pnand %p2698_p1, %p2686_p7  ;;  %p2706_p5 = scmp.lt.s32.totalorder %s2704_s28, %s2697_s26 }
  0x4c   : > { %p2701_p9 = pneg %p2700_p11  ;;  %p2707_p4 = por %p2706_p5, %p2705_p6 }
  0x4e   : > { %p2708_p13 = pnand %p2707_p4, %p2701_p9 }
  0x50   : > { %2711 = shalt.err (!%p2708_p13)
}
  0x51   : > { %s4193_s30 = smov 8   ;;  %s4194_s5 = smov 128  }
  0x52   : > { %2452 = dma.hbm_to_vmem [thread:$0]  (!%p2958_p2), %s2952_s29, 8192, %s2956_s7, %s189_s13, %s4194_s5, %s4194_s5, %s4193_s30  }
  0x53   : > { %s4195_s25 = sshll.u32 %s2945_s24, 9  ;;  %s210_s26 = scalar_lea.sflag [#allocation9], %s2945_s24 }
  0x54   : > { %s213_s27 = scalar_lea.vmem [#allocation8], %s4195_s25  ;;  %s2712_s9 = scalar_lea.hbm %s2965_s12, 8192 }
  0x55   : > { %s220_s6 = sshll.u32 %s213_s27, 4  ;;  %p2713_p1 = scmp.ne.s32.totalorder %s2965_s12, %s2712_s9  ;;  %s2999_s6 = int_to_ptr.vmem [resolvable:$true] %s220_s6 }
  0x56   : > { %s2717_s0 = scalar_lea.hbm %s4171_s3, 16384  ;;  %p2718_p5 = scmp.lt.s32.totalorder %s2965_s12, %s4171_s3 }
  0x57   : > { %p2715_p4 = pnand %p2713_p1, %p2686_p7  ;;  %p2719_p12 = scmp.lt.s32.totalorder %s2717_s0, %s2712_s9 }
  0x59   : > { %p2716_p6 = pneg %p2715_p4  ;;  %p2720_p0 = por %p2719_p12, %p2718_p5 }
  0x5b   : > { %p2721_p10 = pnand %p2720_p0, %p2716_p6 }
  0x5d   : > { %2724 = shalt.err (!%p2721_p10)
}
  0x5e   : > { %s2725_s24 = scalar_lea.vmem %s2999_s6, 8192  ;;  %s2819_s29 = smov [#allocation8]  }
  0x5f   : > { %p2726_p3 = scmp.ne.s32.totalorder %s2999_s6, %s2725_s24  ;;  %s2730_s7 = sshll.u32 %s2819_s29, 4  ;;  %s2731_s7 = int_to_ptr.vmem [resolvable:$false] %s2730_s7 }
  0x60   : > { %s2732_s13 = scalar_lea.vmem %s2731_s7, 16384  ;;  %p2733_p13 = scmp.lt.s32.totalorder %s2999_s6, %s2731_s7 }
  0x61   : > { %p2728_p11 = pnand %p2726_p3, %p2686_p7  ;;  %p2734_p1 = scmp.lt.s32.totalorder %s2732_s13, %s2725_s24 }
  0x63   : > { %p2729_p9 = pneg %p2728_p11  ;;  %p2735_p4 = por %p2734_p1, %p2733_p13 }
  0x65   : > { %p2736_p5 = pnand %p2735_p4, %p2729_p9 }
  0x67   : > { %2739 = shalt.err (!%p2736_p5)
}
  0x68   : > { %2455 = dma.hbm_to_vmem [thread:$0]  (!%p2958_p2), %s2965_s12, 8192, %s2999_s6, %s210_s26, %s4194_s5, %s4194_s5, %s4193_s30  }
  0x69   : > { %232 = sbr.rel (%p2888_p8) target bundleno = 529 (0x211), region = 36  ;;  %s3030_s0 = sand.u32 (!%p2888_p8), 1, %s2804_s16  }
  0x6a   : > { %s3033_s1 = sshll.u32 (!%p2888_p8), %s3030_s0, 9  ;;  %s235_s2 = scalar_lea.sflag (!%p2888_p8), [#allocation3], %s3030_s0 }
  0x6b   : > { %s3037_s8 = scalar_lea.vmem (!%p2888_p8), [#allocation2], %s3033_s1  ;;  %p4196_p7 = scmp.ne.s32.totalorder (!%p2888_p8), %s4184_s21, 0 }
  0x6e   : > { %2783 = dma.done.wait (%p4196_p7), %s235_s2, 8192  }
  0x6f   : > { %2785 = vsyncadd (%p4196_p7), %s235_s2, 4294959104  ;;  %p4197_p2 = scmp.eq.s32.totalorder %s2869_s19, 0 }
  0x71   : > { %2787 = dma.done.wait (%p4197_p2), [#allocation6], 4096   ;;  %p4198_p8 = pmov %p4197_p2 }
  0x72   : > { %s252_s23 = scalar_lea.sflag [#allocation9], %s3030_s0  ;;  %s3049_s12 = scalar_lea.vmem [#allocation8], %s3033_s1 }
  0x73   : > { %2789 = vsyncadd (%p4198_p8), [#allocation6], 4294963200 }
  0x74   : > { %2791 = dma.done.wait (%p4196_p7), %s252_s23, 8192  }
  0x75   : > { %2793 = vsyncadd (%p4196_p7), %s252_s23, 4294959104  ;;  %v447_v0 = vld [vmem:[#allocation7 + $0x78] sm:$0xff]  ;;  %v446_v1 = vld [vmem:[#allocation7 + $0x70] sm:$0xff]  ;;  %s3215_s21 = scalar_lea.vmem [#allocation10], %s3033_s1  ;;  %s2011_s30 = sshll.u32 %s2869_s19, 13 }
  0x76   : > { %2172 = vmatprep.subr.mxu0 %v447_v0  ;;  %v445_v2 = vld [vmem:[#allocation7 + $0x68] sm:$0xff]  ;;  %v367_v3 = vld [vmem:[#allocation5 + $0x78] sm:$0xff]  ;;  %v444_v4 = vld [vmem:[#allocation7 + $0x60] sm:$0xff]  ;;  %s1872_s5 = sshll.u32 %s3215_s21, 4  ;;  %s4121_s6 = scalar_lea.hbm %s4172_s4, %s2011_s30  ;;  %s4123_s5 = int_to_ptr.vmem [resolvable:$true] %s1872_s5 }
  0x77   : > { %2173 = vmatpush3.msra.mxu0 %v447_v0  ;;  %2300 = vmatprep.subr.mxu1 %v367_v3  ;;  %v366_v5 = vld [vmem:[#allocation5 + $0x70] sm:$0xff]  ;;  %v365_v6 = vld [vmem:[#allocation5 + $0x68] sm:$0xff]  ;;  %v443_v7 = vld [vmem:[#allocation7 + $0x58] sm:$0xff]  ;;  %s1859_s19 = scalar_lea.sflag [#allocation4], %s3030_s0  ;;  %s2740_s26 = scalar_lea.vmem %s4123_s5, 8192 }
  0x78   : > { %2174 = vmatprep.subr.mxu0 %v446_v1  ;;  %2301 = vmatpush3.msra.mxu1 %v367_v3  ;;  %v364_v8 = vld [vmem:[#allocation5 + $0x60] sm:$0xff]  ;;  %v442_v9 = vld [vmem:[#allocation7 + $0x50] sm:$0xff]  ;;  %v363_v11 = vld [vmem:[#allocation5 + $0x58] sm:$0xff]  ;;  %p2741_p6 = scmp.ne.s32.totalorder %s4123_s5, %s2740_s26  ;;  %p4199_p12 = scmp.ne.s32.totalorder %s4190_s14, 0 }
  0x79   : > { %2175 = vmatpush3.msra.mxu0 %v446_v1  ;;  %2302 = vmatprep.subr.mxu1 %v366_v5  ;;  %v3056_v10 = vld [vmem:[%s3037_s8] sm:$0xff]  ;;  %v441_v12 = vld [vmem:[#allocation7 + $0x48] sm:$0xff]  ;;  %v362_v13 = vld [vmem:[#allocation5 + $0x50] sm:$0xff]  ;;  %s2820_s9 = smov [#allocation10]  }
  0x7a   : > { %2176 = vmatprep.subr.mxu0 %v445_v2  ;;  %2303 = vmatpush3.msra.mxu1 %v366_v5  ;;  %v368_v14 = vmul.f32 %v3056_v10, %v3056_v10  ;;  %v440_v15 = vld [vmem:[#allocation7 + $0x40] sm:$0xff]  ;;  %v439_v16 = vld [vmem:[#allocation7 + $0x38] sm:$0xff]  ;;  %v361_v17 = vld [vmem:[#allocation5 + $0x48] sm:$0xff]  ;;  %p2742_p0 = pnand %p2741_p6, %p4199_p12  ;;  %s2744_s10 = sshll.u32 %s2820_s9, 4  ;;  %s2745_s10 = int_to_ptr.vmem [resolvable:$false] %s2744_s10 }
  0x7b   : > { %2177 = vmatpush3.msra.mxu0 %v445_v2  ;;  %2304 = vmatprep.subr.mxu1 %v365_v6  ;;  %v438_v18 = vld [vmem:[#allocation7 + $0x30] sm:$0xff]  ;;  %v360_v19 = vld [vmem:[#allocation5 + $0x40] sm:$0xff]  ;;  %v437_v20 = vld [vmem:[#allocation7 + $0x28] sm:$0xff]  ;;  %s2746_s28 = scalar_lea.vmem %s2745_s10, 16384  ;;  %p2747_p3 = scmp.lt.s32.totalorder %s4123_s5, %s2745_s10 }
  0x7c   : > { %2178 = vmatprep.subr.mxu0 %v444_v4  ;;  %2305 = vmatpush3.msra.mxu1 %v365_v6  ;;  %v359_v21 = vld [vmem:[#allocation5 + $0x38] sm:$0xff]  ;;  %v436_v22 = vld [vmem:[#allocation7 + $0x20] sm:$0xff]  ;;  %v358_v23 = vld [vmem:[#allocation5 + $0x30] sm:$0xff]  ;;  %p2743_p10 = pneg %p2742_p0  ;;  %p2748_p11 = scmp.lt.s32.totalorder %s2746_s28, %s2740_s26 }
  0x7d   : > { %2179 = vmatpush3.msra.mxu0 %v444_v4  ;;  %2306 = vmatprep.subr.mxu1 %v364_v8  ;;  %v435_v24 = vld [vmem:[#allocation7 + $0x18] sm:$0xff]  ;;  %v357_v25 = vld [vmem:[#allocation5 + $0x28] sm:$0xff]  ;;  %v434_v26 = vld [vmem:[#allocation7 + $0x10] sm:$0xff] }
  0x7e   : > { %2180 = vmatprep.subr.mxu0 %v443_v7  ;;  %2307 = vmatpush3.msra.mxu1 %v364_v8  ;;  %v356_v27 = vld [vmem:[#allocation5 + $0x20] sm:$0xff]  ;;  %v433_v28 = vld [vmem:[#allocation7 + $0x8] sm:$0xff]  ;;  %v355_v30 = vld [vmem:[#allocation5 + $0x18] sm:$0xff]  ;;  %p2749_p9 = por %p2748_p11, %p2747_p3 }
  0x7f   : > { %2181 = vmatpush3.msra.mxu0 %v443_v7  ;;  %2308 = vmatprep.subr.mxu1 %v363_v11  ;;  %v289_v29 = vld [vmem:[%s3037_s8 + $0x8] sm:$0xff]  ;;  %v290_v31 = vld [vmem:[%s3037_s8 + $0x10] sm:$0xff]  ;;  %v432_v32 = vld [vmem:[#allocation7] sm:$0xff] }
  0x80   : > { %2182 = vmatprep.subr.mxu0 %v442_v9  ;;  %2309 = vmatpush3.msra.mxu1 %v363_v11  ;;  %v354_v33 = vld [vmem:[#allocation5 + $0x10] sm:$0xff]  ;;  %v369_v34 = vmul.f32 %v289_v29, %v289_v29  ;;  %v370_v35 = vmul.f32 %v290_v31, %v290_v31  ;;  %v291_v36 = vld [vmem:[%s3037_s8 + $0x18] sm:$0xff]  ;;  %v353_v37 = vld [vmem:[#allocation5 + $0x8] sm:$0xff]  ;;  %p2750_p13 = pnand %p2749_p9, %p2743_p10 }
  0x81   : > { %2183 = vmatpush3.msra.mxu0 %v442_v9  ;;  %2310 = vmatprep.subr.mxu1 %v362_v13  ;;  %v292_v38 = vld [vmem:[%s3037_s8 + $0x20] sm:$0xff]  ;;  %v371_v40 = vmul.f32 %v291_v36, %v291_v36  ;;  %v293_v42 = vld [vmem:[%s3037_s8 + $0x28] sm:$0xff]  ;;  %v294_v43 = vld [vmem:[%s3037_s8 + $0x30] sm:$0xff] }
  0x82   : > { %2184 = vmatprep.subr.mxu0 %v441_v12  ;;  %2204 = vmatprep.mubr.f32.mxu0 %v368_v14  ;;  %v352_v39 = vld [vmem:[#allocation5] sm:$0xff]  ;;  %v372_v41 = vmul.f32 %v292_v38, %v292_v38  ;;  %v373_v44 = vmul.f32 %v293_v42, %v293_v42  ;;  %v374_v45 = vmul.f32 %v294_v43, %v294_v43  ;;  %v295_v46 = vld [vmem:[%s3037_s8 + $0x38] sm:$0xff]  ;;  %v297_v50 = vld [vmem:[%s3037_s8 + $0x48] sm:$0xff] }
  0x83   : > { %2185 = vmatpush3.msra.mxu0 %v441_v12  ;;  %2311 = vmatpush3.msra.mxu1 %v362_v13  ;;  %v296_v47 = vld [vmem:[%s3037_s8 + $0x40] sm:$0xff]  ;;  %v375_v48 = vmul.f32 %v295_v46, %v295_v46  ;;  %v298_v51 = vld [vmem:[%s3037_s8 + $0x50] sm:$0xff]  ;;  %v377_v52 = vmul.f32 %v297_v50, %v297_v50  ;;  %v299_v54 = vld [vmem:[%s3037_s8 + $0x58] sm:$0xff] }
  0x84   : > { %2186 = vmatprep.subr.mxu0 %v440_v15  ;;  %2312 = vmatprep.subr.mxu1 %v361_v17  ;;  %v376_v49 = vmul.f32 %v296_v47, %v296_v47  ;;  %v378_v53 = vmul.f32 %v298_v51, %v298_v51  ;;  %v300_v55 = vld [vmem:[%s3037_s8 + $0x60] sm:$0xff]  ;;  %v379_v56 = vmul.f32 %v299_v54, %v299_v54  ;;  %v301_v58 = vld [vmem:[%s3037_s8 + $0x68] sm:$0xff]  ;;  %v302_v59 = vld [vmem:[%s3037_s8 + $0x70] sm:$0xff] }
  0x85   : > { %2187 = vmatpush3.msra.mxu0 %v440_v15  ;;  %2313 = vmatpush3.msra.mxu1 %v361_v17  ;;  %v380_v57 = vmul.f32 %v300_v55, %v300_v55  ;;  %v381_v60 = vmul.f32 %v301_v58, %v301_v58  ;;  %v382_v61 = vmul.f32 %v302_v59, %v302_v59  ;;  %v303_v62 = vld [vmem:[%s3037_s8 + $0x78] sm:$0xff]  ;;  %v304_v63 = vld [vmem:[%s3037_s8 + $0x80] sm:$0xff]  ;;  %v305_v2 = vld [vmem:[%s3037_s8 + $0x88] sm:$0xff] }
  0x86   : > { %2188 = vmatprep.subr.mxu0 %v439_v16  ;;  %2314 = vmatprep.subr.mxu1 %v360_v19  ;;  %v383_v0 = vmul.f32 %v303_v62, %v303_v62  ;;  %v384_v1 = vmul.f32 %v304_v63, %v304_v63  ;;  %v306_v3 = vld [vmem:[%s3037_s8 + $0x90] sm:$0xff]  ;;  %v385_v4 = vmul.f32 %v305_v2, %v305_v2  ;;  %v307_v6 = vld [vmem:[%s3037_s8 + $0x98] sm:$0xff]  ;;  %v308_v7 = vld [vmem:[%s3037_s8 + $0xa0] sm:$0xff] }
  0x87   : > { %2189 = vmatpush3.msra.mxu0 %v439_v16  ;;  %2315 = vmatpush3.msra.mxu1 %v360_v19  ;;  %v386_v5 = vmul.f32 %v306_v3, %v306_v3  ;;  %v387_v8 = vmul.f32 %v307_v6, %v307_v6  ;;  %v388_v9 = vmul.f32 %v308_v7, %v308_v7  ;;  %v310_v11 = vld [vmem:[%s3037_s8 + $0xb0] sm:$0xff]  ;;  %v311_v14 = vld [vmem:[%s3037_s8 + $0xb8] sm:$0xff]  ;;  %v312_v15 = vld [vmem:[%s3037_s8 + $0xc0] sm:$0xff] }
  0x88   : > { %2190 = vmatprep.subr.mxu0 %v438_v18  ;;  %2316 = vmatprep.subr.mxu1 %v359_v21  ;;  %v390_v13 = vmul.f32 %v310_v11, %v310_v11  ;;  %v391_v16 = vmul.f32 %v311_v14, %v311_v14  ;;  %v392_v17 = vmul.f32 %v312_v15, %v312_v15  ;;  %v314_v19 = vld [vmem:[%s3037_s8 + $0xd0] sm:$0xff] }
  0x89   : > { %2191 = vmatpush3.msra.mxu0 %v438_v18  ;;  %2317 = vmatpush3.msra.mxu1 %v359_v21  ;;  %v313_v18 = vld [vmem:[%s3037_s8 + $0xc8] sm:$0xff]  ;;  %v394_v21 = vmul.f32 %v314_v19, %v314_v19 }
  0x8a   : > { %2192 = vmatprep.subr.mxu0 %v437_v20  ;;  %2318 = vmatprep.subr.mxu1 %v358_v23 }
  0x8b   : > { %2193 = vmatpush3.msra.mxu0 %v437_v20  ;;  %2319 = vmatpush3.msra.mxu1 %v358_v23  ;;  %v393_v20 = vmul.f32 %v313_v18, %v313_v18  ;;  %v316_v23 = vld [vmem:[%s3037_s8 + $0xe0] sm:$0xff] }
  0x8c   : > { %2194 = vmatprep.subr.mxu0 %v436_v22  ;;  %2320 = vmatprep.subr.mxu1 %v357_v25 }
  0x8d   : > { %2195 = vmatpush3.msra.mxu0 %v436_v22  ;;  %2321 = vmatpush3.msra.mxu1 %v357_v25  ;;  %v315_v22 = vld [vmem:[%s3037_s8 + $0xd8] sm:$0xff]  ;;  %v396_v25 = vmul.f32 %v316_v23, %v316_v23 }
  0x8e   : > { %2196 = vmatprep.subr.mxu0 %v435_v24  ;;  %2322 = vmatprep.subr.mxu1 %v356_v27 }
  0x8f   : > { %2197 = vmatpush3.msra.mxu0 %v435_v24  ;;  %2323 = vmatpush3.msra.mxu1 %v356_v27  ;;  %v395_v24 = vmul.f32 %v315_v22, %v315_v22  ;;  %v318_v27 = vld [vmem:[%s3037_s8 + $0xf0] sm:$0xff] }
  0x90   : > { %2198 = vmatprep.subr.mxu0 %v434_v26  ;;  %2324 = vmatprep.subr.mxu1 %v355_v30 }
  0x91   : > { %2199 = vmatpush3.msra.mxu0 %v434_v26  ;;  %2325 = vmatpush3.msra.mxu1 %v355_v30  ;;  %v317_v26 = vld [vmem:[%s3037_s8 + $0xe8] sm:$0xff]  ;;  %v319_v30 = vld [vmem:[%s3037_s8 + $0xf8] sm:$0xff] }
  0x92   : > { %2200 = vmatprep.subr.mxu0 %v433_v28  ;;  %2326 = vmatprep.subr.mxu1 %v354_v33 }
  0x93   : > { %2201 = vmatpush3.msra.mxu0 %v433_v28  ;;  %2327 = vmatpush3.msra.mxu1 %v354_v33  ;;  %v397_v28 = vmul.f32 %v317_v26, %v317_v26 }
  0x94   : > { %2202 = vmatprep.subr.mxu0 %v432_v32  ;;  %2328 = vmatprep.subr.mxu1 %v353_v37 }
  0x95   : > { %2203 = vmatpush3.msra.mxu0 %v432_v32  ;;  %2329 = vmatpush3.msra.mxu1 %v353_v37  ;;  %v399_v32 = vmul.f32 %v319_v30, %v319_v30 }
  0x96   : > { %2205 = vmatmul.mubr.f32.vlgmr.msra.gmra.mxu0 %v369_v34  ;;  %2330 = vmatprep.subr.mxu1 %v352_v39  ;;  %v321_v34 = vld [vmem:[%s3037_s8 + $0x108] sm:$0xff] }
  0x97   : > { %2207 = vmatprep.mubr.f32.mxu0 %v370_v35  ;;  %2332 = vmatprep.mubr.f32.mxu1 %v3056_v10  ;;  %v309_v10 = vld [vmem:[%s3037_s8 + $0xa8] sm:$0xff]  ;;  %v322_v35 = vld [vmem:[%s3037_s8 + $0x110] sm:$0xff] }
  0x98   : > { %2331 = vmatpush3.msra.mxu1 %v352_v39  ;;  %v389_v12 = vmul.f32 %v309_v10, %v309_v10  ;;  %v402_v37 = vmul.f32 %v322_v35, %v322_v35  ;;  %v324_v39 = vld [vmem:[%s3037_s8 + $0x120] sm:$0xff] }
  0x99   : > { %2333 = vmatmul.mubr.f32.vlgmr.msra.gmra.mxu1 %v289_v29  ;;  %v398_v29 = vmul.f32 %v318_v27, %v318_v27 }
  0x9a   : > { %2208 = vmatmul.mubr.f32.gmra.mxu0 %v371_v40  ;;  %2335 = vmatprep.mubr.f32.mxu1 %v290_v31  ;;  %v320_v31 = vld [vmem:[%s3037_s8 + $0x100] sm:$0xff] }
  0x9b   : > { %2210 = vmatprep.mubr.f32.mxu0 %v372_v41  ;;  %v400_v33 = vmul.f32 %v320_v31, %v320_v31  ;;  %v404_v41 = vmul.f32 %v324_v39, %v324_v39 }
  0x9d   : > { %2336 = vmatmul.mubr.f32.gmra.mxu1 %v291_v36  ;;  %v401_v36 = vmul.f32 %v321_v34, %v321_v34 }
  0x9e   : > { %2211 = vmatmul.mubr.f32.gmra.mxu0 %v373_v44  ;;  %2338 = vmatprep.mubr.f32.mxu1 %v292_v38  ;;  %v323_v38 = vld [vmem:[%s3037_s8 + $0x118] sm:$0xff] }
  0x9f   : > { %2213 = vmatprep.mubr.f32.mxu0 %v374_v45  ;;  %v403_v40 = vmul.f32 %v323_v38, %v323_v38 }
  0xa1   : > { %2339 = vmatmul.mubr.f32.gmra.mxu1 %v293_v42  ;;  %v325_v42 = vld [vmem:[%s3037_s8 + $0x128] sm:$0xff] }
  0xa2   : > { %2214 = vmatmul.mubr.f32.gmra.mxu0 %v375_v48  ;;  %2341 = vmatprep.mubr.f32.mxu1 %v294_v43  ;;  %v326_v43 = vld [vmem:[%s3037_s8 + $0x130] sm:$0xff]  ;;  %v405_v44 = vmul.f32 %v325_v42, %v325_v42 }
  0xa3   : > { %2216 = vmatprep.mubr.f32.mxu0 %v376_v49  ;;  %v406_v45 = vmul.f32 %v326_v43, %v326_v43 }
  0xa5   : > { %2342 = vmatmul.mubr.f32.gmra.mxu1 %v295_v46  ;;  %v327_v46 = vld [vmem:[%s3037_s8 + $0x138] sm:$0xff] }
  0xa6   : > { %2217 = vmatmul.mubr.f32.gmra.mxu0 %v377_v52  ;;  %2344 = vmatprep.mubr.f32.mxu1 %v296_v47  ;;  %v328_v47 = vld [vmem:[%s3037_s8 + $0x140] sm:$0xff]  ;;  %v407_v48 = vmul.f32 %v327_v46, %v327_v46 }
  0xa7   : > { %2219 = vmatprep.mubr.f32.mxu0 %v378_v53  ;;  %v408_v49 = vmul.f32 %v328_v47, %v328_v47 }
  0xa9   : > { %2345 = vmatmul.mubr.f32.gmra.mxu1 %v297_v50  ;;  %v329_v50 = vld [vmem:[%s3037_s8 + $0x148] sm:$0xff] }
  0xaa   : > { %2220 = vmatmul.mubr.f32.gmra.mxu0 %v379_v56  ;;  %2347 = vmatprep.mubr.f32.mxu1 %v298_v51  ;;  %v330_v51 = vld [vmem:[%s3037_s8 + $0x150] sm:$0xff]  ;;  %v409_v52 = vmul.f32 %v329_v50, %v329_v50 }
  0xab   : > { %2222 = vmatprep.mubr.f32.mxu0 %v380_v57  ;;  %v410_v53 = vmul.f32 %v330_v51, %v330_v51 }
  0xad   : > { %2348 = vmatmul.mubr.f32.gmra.mxu1 %v299_v54  ;;  %v331_v54 = vld [vmem:[%s3037_s8 + $0x158] sm:$0xff] }
  0xae   : > { %2223 = vmatmul.mubr.f32.gmra.mxu0 %v381_v60  ;;  %2350 = vmatprep.mubr.f32.mxu1 %v300_v55  ;;  %v332_v55 = vld [vmem:[%s3037_s8 + $0x160] sm:$0xff]  ;;  %v411_v56 = vmul.f32 %v331_v54, %v331_v54 }
  0xaf   : > { %2225 = vmatprep.mubr.f32.mxu0 %v382_v61  ;;  %v412_v57 = vmul.f32 %v332_v55, %v332_v55 }
  0xb1   : > { %2351 = vmatmul.mubr.f32.gmra.mxu1 %v301_v58  ;;  %v333_v58 = vld [vmem:[%s3037_s8 + $0x168] sm:$0xff] }
  0xb2   : > { %2226 = vmatmul.mubr.f32.gmra.mxu0 %v383_v0  ;;  %2353 = vmatprep.mubr.f32.mxu1 %v302_v59  ;;  %v334_v59 = vld [vmem:[%s3037_s8 + $0x170] sm:$0xff]  ;;  %v413_v60 = vmul.f32 %v333_v58, %v333_v58 }
  0xb3   : > { %2228 = vmatprep.mubr.f32.mxu0 %v384_v1  ;;  %v414_v61 = vmul.f32 %v334_v59, %v334_v59 }
  0xb5   : > { %2354 = vmatmul.mubr.f32.gmra.mxu1 %v303_v62  ;;  %v335_v62 = vld [vmem:[%s3037_s8 + $0x178] sm:$0xff] }
  0xb6   : > { %2229 = vmatmul.mubr.f32.gmra.mxu0 %v385_v4  ;;  %2356 = vmatprep.mubr.f32.mxu1 %v304_v63  ;;  %v336_v63 = vld [vmem:[%s3037_s8 + $0x180] sm:$0xff]  ;;  %v415_v0 = vmul.f32 %v335_v62, %v335_v62 }
  0xb7   : > { %2231 = vmatprep.mubr.f32.mxu0 %v386_v5  ;;  %v416_v1 = vmul.f32 %v336_v63, %v336_v63 }
  0xb9   : > { %2357 = vmatmul.mubr.f32.gmra.mxu1 %v305_v2  ;;  %v337_v2 = vld [vmem:[%s3037_s8 + $0x188] sm:$0xff] }
  0xba   : > { %2232 = vmatmul.mubr.f32.gmra.mxu0 %v387_v8  ;;  %2359 = vmatprep.mubr.f32.mxu1 %v306_v3  ;;  %v338_v3 = vld [vmem:[%s3037_s8 + $0x190] sm:$0xff]  ;;  %v417_v4 = vmul.f32 %v337_v2, %v337_v2 }
  0xbb   : > { %2234 = vmatprep.mubr.f32.mxu0 %v388_v9  ;;  %v418_v5 = vmul.f32 %v338_v3, %v338_v3 }
  0xbd   : > { %2360 = vmatmul.mubr.f32.gmra.mxu1 %v307_v6  ;;  %v339_v6 = vld [vmem:[%s3037_s8 + $0x198] sm:$0xff] }
  0xbe   : > { %2235 = vmatmul.mubr.f32.gmra.mxu0 %v389_v12  ;;  %2362 = vmatprep.mubr.f32.mxu1 %v308_v7  ;;  %v340_v7 = vld [vmem:[%s3037_s8 + $0x1a0] sm:$0xff]  ;;  %v419_v8 = vmul.f32 %v339_v6, %v339_v6 }
  0xbf   : > { %2237 = vmatprep.mubr.f32.mxu0 %v390_v13  ;;  %v420_v9 = vmul.f32 %v340_v7, %v340_v7 }
  0xc1   : > { %2363 = vmatmul.mubr.f32.gmra.mxu1 %v309_v10  ;;  %v341_v10 = vld [vmem:[%s3037_s8 + $0x1a8] sm:$0xff] }
  0xc2   : > { %2238 = vmatmul.mubr.f32.gmra.mxu0 %v391_v16  ;;  %2365 = vmatprep.mubr.f32.mxu1 %v310_v11  ;;  %v342_v11 = vld [vmem:[%s3037_s8 + $0x1b0] sm:$0xff]  ;;  %v421_v12 = vmul.f32 %v341_v10, %v341_v10 }
  0xc3   : > { %2240 = vmatprep.mubr.f32.mxu0 %v392_v17  ;;  %v422_v13 = vmul.f32 %v342_v11, %v342_v11 }
  0xc5   : > { %2366 = vmatmul.mubr.f32.gmra.mxu1 %v311_v14  ;;  %v343_v14 = vld [vmem:[%s3037_s8 + $0x1b8] sm:$0xff] }
  0xc6   : > { %2241 = vmatmul.mubr.f32.gmra.mxu0 %v393_v20  ;;  %2368 = vmatprep.mubr.f32.mxu1 %v312_v15  ;;  %v344_v15 = vld [vmem:[%s3037_s8 + $0x1c0] sm:$0xff]  ;;  %v423_v16 = vmul.f32 %v343_v14, %v343_v14 }
  0xc7   : > { %2243 = vmatprep.mubr.f32.mxu0 %v394_v21  ;;  %v424_v17 = vmul.f32 %v344_v15, %v344_v15 }
  0xc9   : > { %2369 = vmatmul.mubr.f32.gmra.mxu1 %v313_v18  ;;  %v345_v18 = vld [vmem:[%s3037_s8 + $0x1c8] sm:$0xff] }
  0xca   : > { %2244 = vmatmul.mubr.f32.gmra.mxu0 %v395_v24  ;;  %2371 = vmatprep.mubr.f32.mxu1 %v314_v19  ;;  %v346_v19 = vld [vmem:[%s3037_s8 + $0x1d0] sm:$0xff]  ;;  %v425_v20 = vmul.f32 %v345_v18, %v345_v18 }
  0xcb   : > { %2246 = vmatprep.mubr.f32.mxu0 %v396_v25  ;;  %v426_v21 = vmul.f32 %v346_v19, %v346_v19 }
  0xcd   : > { %2372 = vmatmul.mubr.f32.gmra.mxu1 %v315_v22  ;;  %v347_v22 = vld [vmem:[%s3037_s8 + $0x1d8] sm:$0xff] }
  0xce   : > { %2247 = vmatmul.mubr.f32.gmra.mxu0 %v397_v28  ;;  %2374 = vmatprep.mubr.f32.mxu1 %v316_v23  ;;  %v348_v23 = vld [vmem:[%s3037_s8 + $0x1e0] sm:$0xff]  ;;  %v427_v24 = vmul.f32 %v347_v22, %v347_v22 }
  0xcf   : > { %2249 = vmatprep.mubr.f32.mxu0 %v398_v29  ;;  %v428_v25 = vmul.f32 %v348_v23, %v348_v23 }
  0xd1   : > { %2375 = vmatmul.mubr.f32.gmra.mxu1 %v317_v26  ;;  %v349_v26 = vld [vmem:[%s3037_s8 + $0x1e8] sm:$0xff] }
  0xd2   : > { %2250 = vmatmul.mubr.f32.gmra.mxu0 %v399_v32  ;;  %2377 = vmatprep.mubr.f32.mxu1 %v318_v27  ;;  %v350_v27 = vld [vmem:[%s3037_s8 + $0x1f0] sm:$0xff]  ;;  %v429_v28 = vmul.f32 %v349_v26, %v349_v26 }
  0xd3   : > { %2252 = vmatprep.mubr.f32.mxu0 %v400_v33  ;;  %v430_v29 = vmul.f32 %v350_v27, %v350_v27 }
  0xd5   : > { %2378 = vmatmul.mubr.f32.gmra.mxu1 %v319_v30  ;;  %v351_v30 = vld [vmem:[%s3037_s8 + $0x1f8] sm:$0xff] }
  0xd6   : > { %2253 = vmatmul.mubr.f32.gmra.mxu0 %v401_v36  ;;  %2380 = vmatprep.mubr.f32.mxu1 %v320_v31  ;;  %v431_v31 = vmul.f32 %v351_v30, %v351_v30 }
  0xd7   : > { %2255 = vmatprep.mubr.f32.mxu0 %v402_v37 }
  0xd9   : > { %2381 = vmatmul.mubr.f32.gmra.mxu1 %v321_v34 }
  0xda   : > { %2256 = vmatmul.mubr.f32.gmra.mxu0 %v403_v40  ;;  %2383 = vmatprep.mubr.f32.mxu1 %v322_v35 }
  0xdb   : > { %2258 = vmatprep.mubr.f32.mxu0 %v404_v41 }
  0xdd   : > { %2384 = vmatmul.mubr.f32.gmra.mxu1 %v323_v38 }
  0xde   : > { %2259 = vmatmul.mubr.f32.gmra.mxu0 %v405_v44  ;;  %2386 = vmatprep.mubr.f32.mxu1 %v324_v39 }
  0xdf   : > { %2261 = vmatprep.mubr.f32.mxu0 %v406_v45 }
  0xe1   : > { %2387 = vmatmul.mubr.f32.gmra.mxu1 %v325_v42 }
  0xe2   : > { %2262 = vmatmul.mubr.f32.gmra.mxu0 %v407_v48  ;;  %2389 = vmatprep.mubr.f32.mxu1 %v326_v43 }
  0xe3   : > { %2264 = vmatprep.mubr.f32.mxu0 %v408_v49 }
  0xe5   : > { %2390 = vmatmul.mubr.f32.gmra.mxu1 %v327_v46 }
  0xe6   : > { %2265 = vmatmul.mubr.f32.gmra.mxu0 %v409_v52  ;;  %2392 = vmatprep.mubr.f32.mxu1 %v328_v47 }
  0xe7   : > { %2267 = vmatprep.mubr.f32.mxu0 %v410_v53 }
  0xe9   : > { %2393 = vmatmul.mubr.f32.gmra.mxu1 %v329_v50 }
  0xea   : > { %2268 = vmatmul.mubr.f32.gmra.mxu0 %v411_v56  ;;  %2395 = vmatprep.mubr.f32.mxu1 %v330_v51 }
  0xeb   : > { %2270 = vmatprep.mubr.f32.mxu0 %v412_v57 }
  0xed   : > { %2396 = vmatmul.mubr.f32.gmra.mxu1 %v331_v54 }
  0xee   : > { %2271 = vmatmul.mubr.f32.gmra.mxu0 %v413_v60  ;;  %2398 = vmatprep.mubr.f32.mxu1 %v332_v55 }
  0xef   : > { %2273 = vmatprep.mubr.f32.mxu0 %v414_v61 }
  0xf1   : > { %2399 = vmatmul.mubr.f32.gmra.mxu1 %v333_v58 }
  0xf2   : > { %2274 = vmatmul.mubr.f32.gmra.mxu0 %v415_v0  ;;  %2401 = vmatprep.mubr.f32.mxu1 %v334_v59 }
  0xf3   : > { %2276 = vmatprep.mubr.f32.mxu0 %v416_v1 }
  0xf5   : > { %2402 = vmatmul.mubr.f32.gmra.mxu1 %v335_v62 }
  0xf6   : > { %2277 = vmatmul.mubr.f32.gmra.mxu0 %v417_v4  ;;  %2404 = vmatprep.mubr.f32.mxu1 %v336_v63  ;;  %v1282_v63 = vld [vmem:[%s3049_s12 + $0x8] sm:$0xff] }
  0xf7   : > { %2279 = vmatprep.mubr.f32.mxu0 %v418_v5 }
  0xf9   : > { %2405 = vmatmul.mubr.f32.gmra.mxu1 %v337_v2 }
  0xfa   : > { %2280 = vmatmul.mubr.f32.gmra.mxu0 %v419_v8  ;;  %2407 = vmatprep.mubr.f32.mxu1 %v338_v3 }
  0xfb   : > { %2282 = vmatprep.mubr.f32.mxu0 %v420_v9  ;;  %v1281_v9 = vld [vmem:[%s3049_s12] sm:$0xff] }
  0xfd   : > { %2408 = vmatmul.mubr.f32.gmra.mxu1 %v339_v6 }
  0xfe   : > { %2283 = vmatmul.mubr.f32.gmra.mxu0 %v421_v12  ;;  %2410 = vmatprep.mubr.f32.mxu1 %v340_v7 }
  0xff   : > { %2285 = vmatprep.mubr.f32.mxu0 %v422_v13 }
 0x101   : > { %2411 = vmatmul.mubr.f32.gmra.mxu1 %v341_v10 }
 0x102   : > { %2286 = vmatmul.mubr.f32.gmra.mxu0 %v423_v16  ;;  %2413 = vmatprep.mubr.f32.mxu1 %v342_v11 }
 0x103   : > { %2288 = vmatprep.mubr.f32.mxu0 %v424_v17 }
 0x105   : > { %2414 = vmatmul.mubr.f32.gmra.mxu1 %v343_v14 }
 0x106   : > { %2289 = vmatmul.mubr.f32.gmra.mxu0 %v425_v20  ;;  %2416 = vmatprep.mubr.f32.mxu1 %v344_v15 }
 0x107   : > { %2291 = vmatprep.mubr.f32.mxu0 %v426_v21 }
 0x109   : > { %2417 = vmatmul.mubr.f32.gmra.mxu1 %v345_v18 }
 0x10a   : > { %2292 = vmatmul.mubr.f32.gmra.mxu0 %v427_v24  ;;  %2419 = vmatprep.mubr.f32.mxu1 %v346_v19  ;;  %v1284_v24 = vld [vmem:[%s3049_s12 + $0x18] sm:$0xff] }
 0x10b   : > { %2294 = vmatprep.mubr.f32.mxu0 %v428_v25 }
 0x10d   : > { %2420 = vmatmul.mubr.f32.gmra.mxu1 %v347_v22 }
 0x10e   : > { %2295 = vmatmul.mubr.f32.gmra.mxu0 %v429_v28  ;;  %2422 = vmatprep.mubr.f32.mxu1 %v348_v23 }
 0x10f   : > { %2297 = vmatprep.mubr.f32.mxu0 %v430_v29 }
 0x111   : > { %2423 = vmatmul.mubr.f32.gmra.mxu1 %v349_v26 }
 0x112   : > { %2298 = vmatmul.mubr.f32.gmra.mxu0 %v431_v31  ;;  %2425 = vmatprep.mubr.f32.mxu1 %v350_v27 }
 0x115   : > { %2426 = vmatmul.mubr.f32.gmra.mxu1 %v351_v30 }
 0x156   : > { %v2206_v32 = vpop.f32.mrf.mxu0 }
 0x157   : > { %v520_v33 = vadd.f32 1e-08, %v2206_v32 }
 0x158   : > { %v514_v34 = vpop.f32.mrf.mxu0 }
 0x159   : > { %2504 = vrsqrt.f32 %v520_v33  ;;  %v3124_v35 = vadd.f32 1e-08, %v514_v34  ;;  %v3126_v37 = vpop.f32.mrf.mxu1  ;;  %vm842_vm0 = vcmp.eq.f32.partialorder %v520_v33, inf  ;;  %vm844_vm1 = vcmp.eq.f32.partialorder %v520_v33, 0.0 }
 0x15a   : > { %v2209_v36 = vpop.f32.mrf.mxu0  ;;  %v845_v54 = vand.u32 2147483648, %v520_v33 }
 0x15b   : > { %2506 = vrsqrt.f32 %v3124_v35  ;;  %v3129_v38 = vadd.f32 1e-08, %v2209_v36  ;;  %v3131_v40 = vpop.f32.mrf.mxu1  ;;  %vm835_vm2 = vcmp.eq.f32.partialorder %v3124_v35, inf  ;;  %vm837_vm3 = vcmp.eq.f32.partialorder %v3124_v35, 0.0 }
 0x15c   : > { %v524_v39 = vpop.f32.mrf.mxu0  ;;  %v838_v57 = vand.u32 2147483648, %v3124_v35 }
 0x15d   : > { %2508 = vrsqrt.f32 %v3129_v38  ;;  %v3134_v41 = vadd.f32 1e-08, %v524_v39  ;;  %v3136_v43 = vpop.f32.mrf.mxu1  ;;  %vm856_vm4 = vcmp.eq.f32.partialorder %v3129_v38, inf  ;;  %vm858_vm5 = vcmp.eq.f32.partialorder %v3129_v38, 0.0 }
 0x15e   : > { %v2212_v42 = vpop.f32.mrf.mxu0  ;;  %v859_v0 = vand.u32 2147483648, %v3129_v38 }
 0x15f   : > { %2510 = vrsqrt.f32 %v3134_v41  ;;  %v3139_v44 = vadd.f32 1e-08, %v2212_v42  ;;  %v3141_v46 = vpop.f32.mrf.mxu1  ;;  %vm849_vm6 = vcmp.eq.f32.partialorder %v3134_v41, inf  ;;  %vm851_vm7 = vcmp.eq.f32.partialorder %v3134_v41, 0.0 }
 0x160   : > { %v534_v45 = vpop.f32.mrf.mxu0  ;;  %v852_v1 = vand.u32 2147483648, %v3134_v41 }
 0x161   : > { %2512 = vrsqrt.f32 %v3139_v44  ;;  %v3144_v47 = vadd.f32 1e-08, %v534_v45  ;;  %v3146_v49 = vpop.f32.mrf.mxu1  ;;  %vm870_vm8 = vcmp.eq.f32.partialorder %v3139_v44, inf  ;;  %vm872_vm9 = vcmp.eq.f32.partialorder %v3139_v44, 0.0 }
 0x162   : > { %v2215_v48 = vpop.f32.mrf.mxu0  ;;  %v873_v10 = vand.u32 2147483648, %v3139_v44 }
 0x163   : > { %2514 = vrsqrt.f32 %v3144_v47  ;;  %v3149_v50 = vadd.f32 1e-08, %v2215_v48  ;;  %v3151_v52 = vpop.f32.mrf.mxu1  ;;  %vm863_vm10 = vcmp.eq.f32.partialorder %v3144_v47, inf  ;;  %vm865_vm11 = vcmp.eq.f32.partialorder %v3144_v47, 0.0 }
 0x164   : > { %v544_v51 = vpop.f32.mrf.mxu0  ;;  %v866_v19 = vand.u32 2147483648, %v3144_v47 }
 0x165   : > { %2516 = vrsqrt.f32 %v3149_v50  ;;  %v3154_v53 = vadd.f32 1e-08, %v544_v51  ;;  %v3160_v58 = vpop.f32.mrf.mxu1  ;;  %vm884_vm12 = vcmp.eq.f32.partialorder %v3149_v50, inf  ;;  %vm886_vm13 = vcmp.eq.f32.partialorder %v3149_v50, 0.0 }
 0x166   : > { %v2505_v55 = vpop.eup %2504  ;;  %v2218_v56 = vpop.f32.mrf.mxu0  ;;  %v887_v29 = vand.u32 2147483648, %v3149_v50 }
 0x167   : > { %2518 = vrsqrt.f32 %v3154_v53  ;;  %v3163_v59 = vadd.f32 1e-08, %v2218_v56  ;;  %v841_v60 = vmul.f32 %v2505_v55, %v520_v33  ;;  %v3171_v2 = vpop.f32.mrf.mxu1  ;;  %v880_v30 = vand.u32 2147483648, %v3154_v53 }
 0x168   : > { %v2507_v61 = vpop.eup %2506  ;;  %v554_v62 = vpop.f32.mrf.mxu0  ;;  %vm877_vm14 = vcmp.eq.f32.partialorder %v3154_v53, inf  ;;  %vm879_vm15 = vcmp.eq.f32.partialorder %v3154_v53, 0.0 }
 0x169   : > { %2520 = vrsqrt.f32 %v3163_v59  ;;  %v3174_v3 = vadd.f32 1e-08, %v554_v62  ;;  %v843_v4 = vsel %vm842_vm0, %v520_v33, %v841_v60  ;;  %v834_v5 = vmul.f32 %v2507_v61, %v3124_v35  ;;  %v3184_v11 = vpop.f32.mrf.mxu1 }
 0x16a   : > { %v2509_v6 = vpop.eup %2508  ;;  %v2221_v7 = vpop.f32.mrf.mxu0  ;;  %v846_v8 = vsel %vm844_vm1, %v845_v54, %v843_v4  ;;  %v1286_v54 = vld [vmem:[%s3049_s12 + $0x28] sm:$0xff]  ;;  %vm898_vm0 = vcmp.eq.f32.partialorder %v3163_v59, inf  ;;  %vm900_vm1 = vcmp.eq.f32.partialorder %v3163_v59, 0.0 }
 0x16b   : > { %2522 = vrsqrt.f32 %v3174_v3  ;;  %v3187_v12 = vadd.f32 1e-08, %v2221_v7  ;;  %v1346_v13 = vmul.f32 %v1282_v63, %v846_v8  ;;  %v836_v14 = vsel %vm835_vm2, %v3124_v35, %v834_v5  ;;  %v3197_v20 = vpop.f32.mrf.mxu1  ;;  %v1283_v35 = vld [vmem:[%s3049_s12 + $0x10] sm:$0xff]  ;;  %v1285_v63 = vld [vmem:[%s3049_s12 + $0x20] sm:$0xff] }
 0x16c   : > { %v2511_v15 = vpop.eup %2510  ;;  %v564_v16 = vpop.f32.mrf.mxu0  ;;  %v839_v17 = vsel %vm837_vm3, %v838_v57, %v836_v14  ;;  %v855_v18 = vmul.f32 %v2509_v6, %v3129_v38  ;;  %vm891_vm2 = vcmp.eq.f32.partialorder %v3174_v3, inf  ;;  %vm893_vm3 = vcmp.eq.f32.partialorder %v3174_v3, 0.0 }
 0x16d   : > { %2524 = vrsqrt.f32 %v3187_v12  ;;  %v1481_v21 = vadd.f32 %v3126_v37, %v1346_v13  ;;  %v3201_v22 = vadd.f32 1e-08, %v564_v16  ;;  %v1345_v23 = vmul.f32 %v1281_v9, %v839_v17  ;;  %v3212_v31 = vpop.f32.mrf.mxu1 }
 0x16e   : > { %v2513_v25 = vpop.eup %2512  ;;  %v2224_v26 = vpop.f32.mrf.mxu0  ;;  %v857_v27 = vsel %vm856_vm4, %v3129_v38, %v855_v18  ;;  %v848_v28 = vmul.f32 %v2511_v15, %v3134_v41  ;;  %v1288_v15 = vld [vmem:[%s3049_s12 + $0x38] sm:$0xff]  ;;  %vm912_vm4 = vcmp.eq.f32.partialorder %v3187_v12, inf }
 0x16f   : > { %1795 = vst [vmem:[%s3215_s21 + $0x8] sm:$0xff] %v1481_v21  ;;  %2526 = vrsqrt.f32 %v3201_v22  ;;  %v1476_v32 = vadd.f32 %v3131_v40, %v1345_v23  ;;  %v3220_v33 = vadd.f32 1e-08, %v2224_v26  ;;  %v860_v34 = vsel %vm858_vm5, %v859_v0, %v857_v27  ;;  %v3232_v38 = vpop.f32.mrf.mxu1 }
 0x170   : > { %v2515_v36 = vpop.eup %2514  ;;  %v1348_v37 = vmul.f32 %v1284_v24, %v860_v34  ;;  %v574_v39 = vpop.f32.mrf.mxu0  ;;  %v850_v42 = vsel %vm849_vm6, %v3134_v41, %v848_v28  ;;  %v869_v45 = vmul.f32 %v2513_v25, %v3139_v44  ;;  %v901_v40 = vand.u32 2147483648, %v3163_v59  ;;  %v1287_v25 = vld [vmem:[%s3049_s12 + $0x30] sm:$0xff] }
 0x171   : > { %1794 = vst [vmem:[%s3215_s21] sm:$0xff] %v1476_v32  ;;  %2528 = vrsqrt.f32 %v3220_v33  ;;  %v3236_v48 = vadd.f32 1e-08, %v574_v39  ;;  %v853_v51 = vsel %vm851_vm7, %v852_v1, %v850_v42  ;;  %v862_v55 = vmul.f32 %v2515_v36, %v3144_v47  ;;  %v3251_v0 = vpop.f32.mrf.mxu1  ;;  %v1290_v36 = vld [vmem:[%s3049_s12 + $0x48] sm:$0xff] }
 0x172   : > { %v2517_v56 = vpop.eup %2516  ;;  %v1491_v57 = vadd.f32 %v3136_v43, %v1348_v37  ;;  %v1347_v60 = vmul.f32 %v1283_v35, %v853_v51  ;;  %v2227_v61 = vpop.f32.mrf.mxu0  ;;  %v871_v62 = vsel %vm870_vm8, %v3139_v44, %v869_v45  ;;  %v894_v41 = vand.u32 2147483648, %v3174_v3 }
 0x173   : > { %2530 = vrsqrt.f32 %v3236_v48  ;;  %v3254_v1 = vadd.f32 1e-08, %v2227_v61  ;;  %v874_v43 = vsel %vm872_vm9, %v873_v10, %v871_v62  ;;  %v864_v4 = vsel %vm863_vm10, %v3144_v47, %v862_v55  ;;  %v3269_v44 = vpop.f32.mrf.mxu1  ;;  %v1289_v55 = vld [vmem:[%s3049_s12 + $0x40] sm:$0xff] }
 0x174   : > { %v2519_v5 = vpop.eup %2518  ;;  %1797 = vst [vmem:[%s3215_s21 + $0x18] sm:$0xff] %v1491_v57  ;;  %v1486_v6 = vadd.f32 %v3141_v46, %v1347_v60  ;;  %v1350_v7 = vmul.f32 %v1286_v54, %v874_v43  ;;  %v584_v8 = vpop.f32.mrf.mxu0  ;;  %v867_v9 = vsel %vm865_vm11, %v866_v19, %v864_v4  ;;  %v883_v13 = vmul.f32 %v2517_v56, %v3149_v50 }
 0x175   : > { %2532 = vrsqrt.f32 %v3254_v1  ;;  %v3272_v10 = vadd.f32 1e-08, %v584_v8  ;;  %v1349_v14 = vmul.f32 %v1285_v63, %v867_v9  ;;  %v876_v16 = vmul.f32 %v2519_v5, %v3154_v53  ;;  %v3284_v21 = vpop.f32.mrf.mxu1  ;;  %v1292_v5 = vld [vmem:[%s3049_s12 + $0x58] sm:$0xff] }
 0x176   : > { %v2521_v46 = vpop.eup %2520  ;;  %1796 = vst [vmem:[%s3215_s21 + $0x10] sm:$0xff] %v1486_v6  ;;  %v1501_v47 = vadd.f32 %v3146_v49, %v1350_v7  ;;  %v2230_v17 = vpop.f32.mrf.mxu0  ;;  %v885_v18 = vsel %vm884_vm12, %v3149_v50, %v883_v13  ;;  %vm914_vm5 = vcmp.eq.f32.partialorder %v3187_v12, 0.0  ;;  %v915_v19 = vand.u32 2147483648, %v3187_v12 }
 0x177   : > { %2534 = vrsqrt.f32 %v3272_v10  ;;  %v1496_v23 = vadd.f32 %v3151_v52, %v1349_v14  ;;  %v3288_v24 = vadd.f32 1e-08, %v2230_v17  ;;  %v888_v49 = vsel %vm886_vm13, %v887_v29, %v885_v18  ;;  %v3303_v29 = vpop.f32.mrf.mxu1 }
 0x178   : > { %vm905_vm6 = vcmp.eq.f32.partialorder %v3201_v22, inf  ;;  %v2523_v26 = vpop.eup %2522  ;;  %1799 = vst [vmem:[%s3215_s21 + $0x28] sm:$0xff] %v1501_v47  ;;  %v1352_v27 = vmul.f32 %v1288_v15, %v888_v49  ;;  %v594_v28 = vpop.f32.mrf.mxu0  ;;  %v878_v32 = vsel %vm877_vm14, %v3154_v53, %v876_v16  ;;  %v897_v52 = vmul.f32 %v2521_v46, %v3163_v59  ;;  %v1291_v15 = vld [vmem:[%s3049_s12 + $0x50] sm:$0xff] }
 0x179   : > { %vm907_vm7 = vcmp.eq.f32.partialorder %v3201_v22, 0.0  ;;  %v908_v50 = vand.u32 2147483648, %v3201_v22  ;;  %1798 = vst [vmem:[%s3215_s21 + $0x20] sm:$0xff] %v1496_v23  ;;  %2536 = vrsqrt.f32 %v3288_v24  ;;  %v3307_v34 = vadd.f32 1e-08, %v594_v28  ;;  %v3321_v56 = vpop.f32.mrf.mxu1  ;;  %v1294_v23 = vld [vmem:[%s3049_s12 + $0x68] sm:$0xff] }
 0x17a   : > { %v881_v35 = vsel %vm879_vm15, %v880_v30, %v878_v32  ;;  %v890_v37 = vmul.f32 %v2523_v26, %v3174_v3  ;;  %v2525_v39 = vpop.eup %2524  ;;  %v1511_v42 = vadd.f32 %v3160_v58, %v1352_v27  ;;  %v2233_v51 = vpop.f32.mrf.mxu0  ;;  %v899_v54 = vsel %vm898_vm0, %v3163_v59, %v897_v52 }
 0x17b   : > { %v1351_v45 = vmul.f32 %v1287_v25, %v881_v35  ;;  %vm926_vm8 = vcmp.eq.f32.partialorder %v3220_v33, inf  ;;  %2538 = vrsqrt.f32 %v3307_v34  ;;  %v3324_v53 = vadd.f32 1e-08, %v2233_v51  ;;  %v3340_v59 = vpop.f32.mrf.mxu1 }
 0x17c   : > { %v902_v58 = vsel %vm900_vm1, %v901_v40, %v899_v54  ;;  %v892_v30 = vsel %vm891_vm2, %v3174_v3, %v890_v37  ;;  %v2527_v57 = vpop.eup %2526  ;;  %1801 = vst [vmem:[%s3215_s21 + $0x38] sm:$0xff] %v1511_v42  ;;  %v604_v62 = vpop.f32.mrf.mxu0  ;;  %v911_v43 = vmul.f32 %v2525_v39, %v3187_v12  ;;  %vm928_vm9 = vcmp.eq.f32.partialorder %v3220_v33, 0.0 }
 0x17d   : > { %v1506_v60 = vadd.f32 %v3171_v2, %v1351_v45  ;;  %v1354_v61 = vmul.f32 %v1290_v36, %v902_v58  ;;  %v895_v63 = vsel %vm893_vm3, %v894_v41, %v892_v30  ;;  %2540 = vrsqrt.f32 %v3324_v53  ;;  %v3354_v9 = vpop.f32.mrf.mxu1  ;;  %v1293_v45 = vld [vmem:[%s3049_s12 + $0x60] sm:$0xff] }
 0x17e   : > { %v3343_v40 = vadd.f32 1e-08, %v604_v62  ;;  %v1353_v4 = vmul.f32 %v1289_v55, %v895_v63  ;;  %v904_v2 = vmul.f32 %v2527_v57, %v3201_v22  ;;  %v2529_v6 = vpop.eup %2528  ;;  %v2236_v3 = vpop.f32.mrf.mxu0  ;;  %v913_v41 = vsel %vm912_vm4, %v3187_v12, %v911_v43 }
 0x17f   : > { %1800 = vst [vmem:[%s3215_s21 + $0x30] sm:$0xff] %v1506_v60  ;;  %v1521_v7 = vadd.f32 %v3184_v11, %v1354_v61  ;;  %v929_v8 = vand.u32 2147483648, %v3220_v33  ;;  %v3358_v14 = vadd.f32 1e-08, %v2236_v3  ;;  %v916_v11 = vsel %vm914_vm5, %v915_v19, %v913_v41  ;;  %v1296_v61 = vld [vmem:[%s3049_s12 + $0x78] sm:$0xff] }
 0x180   : > { %2542 = vrsqrt.f32 %v3343_v40  ;;  %v1516_v13 = vadd.f32 %v3197_v20, %v1353_v4  ;;  %v2531_v16 = vpop.eup %2530  ;;  %v1356_v46 = vmul.f32 %v1292_v5, %v916_v11  ;;  %v614_v47 = vpop.f32.mrf.mxu0  ;;  %v906_v17 = vsel %vm905_vm6, %v3201_v22, %v904_v2 }
 0x181   : > { %1803 = vst [vmem:[%s3215_s21 + $0x48] sm:$0xff] %v1521_v7  ;;  %v925_v18 = vmul.f32 %v2529_v6, %v3220_v33  ;;  %vm919_vm10 = vcmp.eq.f32.partialorder %v3236_v48, inf  ;;  %v3369_v20 = vpop.f32.mrf.mxu1  ;;  %2544 = vrsqrt.f32 %v3358_v14  ;;  %v3373_v12 = vadd.f32 1e-08, %v614_v47 }
 0x182   : > { %1802 = vst [vmem:[%s3215_s21 + $0x40] sm:$0xff] %v1516_v13  ;;  %v909_v19 = vsel %vm907_vm7, %v908_v50, %v906_v17  ;;  %v918_v49 = vmul.f32 %v2531_v16, %v3236_v48  ;;  %v2533_v25 = vpop.eup %2532  ;;  %v1531_v26 = vadd.f32 %v3212_v31, %v1356_v46  ;;  %v2239_v28 = vpop.f32.mrf.mxu0  ;;  %vm921_vm11 = vcmp.eq.f32.partialorder %v3236_v48, 0.0 }
 0x183   : > { %v1355_v27 = vmul.f32 %v1291_v15, %v909_v19  ;;  %v927_v32 = vsel %vm926_vm8, %v3220_v33, %v925_v18  ;;  %v3384_v52 = vpop.f32.mrf.mxu1  ;;  %2546 = vrsqrt.f32 %v3373_v12  ;;  %v3387_v22 = vadd.f32 1e-08, %v2239_v28 }
 0x184   : > { %v930_v50 = vsel %vm928_vm9, %v929_v8, %v927_v32  ;;  %v920_v31 = vsel %vm919_vm10, %v3236_v48, %v918_v49  ;;  %v2535_v35 = vpop.eup %2534  ;;  %1805 = vst [vmem:[%s3215_s21 + $0x58] sm:$0xff] %v1531_v26  ;;  %v624_v39 = vpop.f32.mrf.mxu0  ;;  %v922_v42 = vand.u32 2147483648, %v3236_v48  ;;  %v939_v51 = vmul.f32 %v2533_v25, %v3254_v1  ;;  %v1295_v8 = vld [vmem:[%s3049_s12 + $0x70] sm:$0xff]  ;;  %v1298_v49 = vld [vmem:[%s3049_s12 + $0x88] sm:$0xff] }
 0x185   : > { %v1526_v36 = vadd.f32 %v3232_v38, %v1355_v27  ;;  %v1358_v37 = vmul.f32 %v1294_v23, %v930_v50  ;;  %v3399_v54 = vpop.f32.mrf.mxu1  ;;  %2548 = vrsqrt.f32 %v3387_v22  ;;  %v3402_v33 = vadd.f32 1e-08, %v624_v39 }
 0x186   : > { %vm940_vm12 = vcmp.eq.f32.partialorder %v3254_v1, inf  ;;  %vm942_vm13 = vcmp.eq.f32.partialorder %v3254_v1, 0.0  ;;  %v2537_v38 = vpop.eup %2536  ;;  %v923_v58 = vsel %vm921_vm11, %v922_v42, %v920_v31  ;;  %v2242_v30 = vpop.f32.mrf.mxu0  ;;  %v943_v60 = vand.u32 2147483648, %v3254_v1 }
 0x187   : > { %1804 = vst [vmem:[%s3215_s21 + $0x50] sm:$0xff] %v1526_v36  ;;  %v1541_v55 = vadd.f32 %v3251_v0, %v1358_v37  ;;  %v941_v57 = vsel %vm940_vm12, %v3254_v1, %v939_v51  ;;  %v3413_v62 = vpop.f32.mrf.mxu1  ;;  %2550 = vrsqrt.f32 %v3402_v33  ;;  %v1357_v63 = vmul.f32 %v1293_v45, %v923_v58  ;;  %v1300_v51 = vld [vmem:[%s3049_s12 + $0x98] sm:$0xff] }
 0x188   : > { %v3416_v43 = vadd.f32 1e-08, %v2242_v30  ;;  %v932_v4 = vmul.f32 %v2535_v35, %v3272_v10  ;;  %v2539_v0 = vpop.eup %2538  ;;  %v944_v48 = vsel %vm942_vm13, %v943_v60, %v941_v57  ;;  %v634_v5 = vpop.f32.mrf.mxu0  ;;  %vm933_vm14 = vcmp.eq.f32.partialorder %v3272_v10, inf  ;;  %v1297_v35 = vld [vmem:[%s3049_s12 + $0x80] sm:$0xff] }
 0x189   : > { %1807 = vst [vmem:[%s3215_s21 + $0x68] sm:$0xff] %v1541_v55  ;;  %vm935_vm15 = vcmp.eq.f32.partialorder %v3272_v10, 0.0  ;;  %v936_v2 = vand.u32 2147483648, %v3272_v10  ;;  %v3425_v6 = vpop.f32.mrf.mxu1  ;;  %v1536_v7 = vadd.f32 %v3269_v44, %v1357_v63  ;;  %v1360_v3 = vmul.f32 %v1296_v61, %v944_v48 }
 0x18a   : > { %2552 = vrsqrt.f32 %v3416_v43  ;;  %v3429_v41 = vadd.f32 1e-08, %v634_v5  ;;  %v2541_v1 = vpop.eup %2540  ;;  %v934_v13 = vsel %vm933_vm14, %v3272_v10, %v932_v4  ;;  %v2245_v11 = vpop.f32.mrf.mxu0  ;;  %v953_v15 = vmul.f32 %v2537_v38, %v3288_v24 }
 0x18b   : > { %vm954_vm0 = vcmp.eq.f32.partialorder %v3288_v24, inf  ;;  %vm956_vm1 = vcmp.eq.f32.partialorder %v3288_v24, 0.0  ;;  %v3436_v16 = vpop.f32.mrf.mxu1  ;;  %1806 = vst [vmem:[%s3215_s21 + $0x60] sm:$0xff] %v1536_v7  ;;  %v1551_v44 = vadd.f32 %v3284_v21, %v1360_v3  ;;  %v937_v46 = vsel %vm935_vm15, %v936_v2, %v934_v13  ;;  %v1299_v2 = vld [vmem:[%s3049_s12 + $0x90] sm:$0xff] }
 0x18c   : > { %2554 = vrsqrt.f32 %v3429_v41  ;;  %v3443_v47 = vadd.f32 1e-08, %v2245_v11  ;;  %v1359_v18 = vmul.f32 %v1295_v8, %v937_v46  ;;  %v955_v19 = vsel %vm954_vm0, %v3288_v24, %v953_v15  ;;  %v644_v25 = vpop.f32.mrf.mxu0 }
 0x18d   : > { %v2543_v17 = vpop.eup %2542  ;;  %v957_v23 = vand.u32 2147483648, %v3288_v24  ;;  %v946_v26 = vmul.f32 %v2539_v0, %v3307_v34  ;;  %v3449_v27 = vpop.f32.mrf.mxu1  ;;  %1809 = vst [vmem:[%s3215_s21 + $0x78] sm:$0xff] %v1551_v44  ;;  %v3453_v10 = vadd.f32 1e-08, %v644_v25  ;;  %vm947_vm2 = vcmp.eq.f32.partialorder %v3307_v34, inf }
 0x18e   : > { %2556 = vrsqrt.f32 %v3443_v47  ;;  %vm949_vm3 = vcmp.eq.f32.partialorder %v3307_v34, 0.0  ;;  %v2545_v21 = vpop.eup %2544  ;;  %v1546_v28 = vadd.f32 %v3303_v29, %v1359_v18  ;;  %v950_v31 = vand.u32 2147483648, %v3307_v34  ;;  %v2248_v36 = vpop.f32.mrf.mxu0  ;;  %v1302_v18 = vld [vmem:[%s3049_s12 + $0xa8] sm:$0xff] }
 0x18f   : > { %v958_v32 = vsel %vm956_vm1, %v957_v23, %v955_v19  ;;  %v948_v50 = vsel %vm947_vm2, %v3307_v34, %v946_v26  ;;  %v3463_v37 = vpop.f32.mrf.mxu1  ;;  %2558 = vrsqrt.f32 %v3453_v10  ;;  %v3466_v42 = vadd.f32 1e-08, %v2248_v36 }
 0x190   : > { %v1362_v39 = vmul.f32 %v1298_v49, %v958_v32  ;;  %v967_v45 = vmul.f32 %v2541_v1, %v3324_v53  ;;  %v2547_v29 = vpop.eup %2546  ;;  %1808 = vst [vmem:[%s3215_s21 + $0x70] sm:$0xff] %v1546_v28  ;;  %v951_v24 = vsel %vm949_vm3, %v950_v31, %v948_v50  ;;  %vm968_vm4 = vcmp.eq.f32.partialorder %v3324_v53, inf  ;;  %v654_v38 = vpop.f32.mrf.mxu0  ;;  %v1301_v32 = vld [vmem:[%s3049_s12 + $0xa0] sm:$0xff] }
 0x191   : > { %vm970_vm5 = vcmp.eq.f32.partialorder %v3324_v53, 0.0  ;;  %v971_v34 = vand.u32 2147483648, %v3324_v53  ;;  %v3474_v55 = vpop.f32.mrf.mxu1  ;;  %v1361_v30 = vmul.f32 %v1297_v35, %v951_v24  ;;  %2560 = vrsqrt.f32 %v3466_v42 }
 0x192   : > { %v1561_v58 = vadd.f32 %v3321_v56, %v1362_v39  ;;  %v969_v57 = vsel %vm968_vm4, %v3324_v53, %v967_v45  ;;  %v2549_v60 = vpop.eup %2548  ;;  %v3479_v63 = vadd.f32 1e-08, %v654_v38  ;;  %v960_v4 = vmul.f32 %v2543_v17, %v3343_v40  ;;  %v2251_v0 = vpop.f32.mrf.mxu0 }
 0x193   : > { %v972_v61 = vsel %vm970_vm5, %v971_v34, %v969_v57  ;;  %vm961_vm6 = vcmp.eq.f32.partialorder %v3343_v40, inf  ;;  %v3483_v48 = vpop.f32.mrf.mxu1  ;;  %v1556_v56 = vadd.f32 %v3340_v59, %v1361_v30  ;;  %vm963_vm7 = vcmp.eq.f32.partialorder %v3343_v40, 0.0 }
 0x194   : > { %1811 = vst [vmem:[%s3215_s21 + $0x88] sm:$0xff] %v1561_v58  ;;  %v1364_v5 = vmul.f32 %v1300_v51, %v972_v61  ;;  %v964_v53 = vand.u32 2147483648, %v3343_v40  ;;  %v2551_v7 = vpop.eup %2550  ;;  %2562 = vrsqrt.f32 %v3479_v63  ;;  %v962_v3 = vsel %vm961_vm6, %v3343_v40, %v960_v4  ;;  %v664_v13 = vpop.f32.mrf.mxu0  ;;  %v1304_v58 = vld [vmem:[%s3049_s12 + $0xb8] sm:$0xff] }
 0x195   : > { %v3492_v8 = vadd.f32 1e-08, %v2251_v0  ;;  %v981_v1 = vmul.f32 %v2545_v21, %v3358_v14  ;;  %v3495_v11 = vpop.f32.mrf.mxu1  ;;  %1810 = vst [vmem:[%s3215_s21 + $0x80] sm:$0xff] %v1556_v56  ;;  %vm982_vm8 = vcmp.eq.f32.partialorder %v3358_v14, inf  ;;  %vm984_vm9 = vcmp.eq.f32.partialorder %v3358_v14, 0.0 }
 0x196   : > { %v1571_v59 = vadd.f32 %v3354_v9, %v1364_v5  ;;  %v965_v15 = vsel %vm963_vm7, %v964_v53, %v962_v3  ;;  %v985_v17 = vand.u32 2147483648, %v3358_v14  ;;  %v2254_v19 = vpop.f32.mrf.mxu0  ;;  %v3508_v9 = vadd.f32 1e-08, %v664_v13  ;;  %v1303_v5 = vld [vmem:[%s3049_s12 + $0xb0] sm:$0xff] }
 0x197   : > { %v2553_v44 = vpop.eup %2552  ;;  %v1363_v46 = vmul.f32 %v1299_v2, %v965_v15  ;;  %2564 = vrsqrt.f32 %v3492_v8  ;;  %v983_v40 = vsel %vm982_vm8, %v3358_v14, %v981_v1  ;;  %v3505_v23 = vpop.f32.mrf.mxu1  ;;  %v974_v49 = vmul.f32 %v2547_v29, %v3373_v12 }
 0x198   : > { %1813 = vst [vmem:[%s3215_s21 + $0x98] sm:$0xff] %v1571_v59  ;;  %vm975_vm10 = vcmp.eq.f32.partialorder %v3373_v12, inf  ;;  %vm977_vm11 = vcmp.eq.f32.partialorder %v3373_v12, 0.0  ;;  %v986_v21 = vsel %vm984_vm9, %v985_v17, %v983_v40  ;;  %v978_v28 = vand.u32 2147483648, %v3373_v12  ;;  %v674_v31 = vpop.f32.mrf.mxu0  ;;  %v1306_v40 = vld [vmem:[%s3049_s12 + $0xc8] sm:$0xff] }
 0x199   : > { %v2555_v25 = vpop.eup %2554  ;;  %v1566_v26 = vadd.f32 %v3369_v20, %v1363_v46  ;;  %v3518_v50 = vadd.f32 1e-08, %v2254_v19  ;;  %v3520_v35 = vpop.f32.mrf.mxu1  ;;  %v1366_v36 = vmul.f32 %v1302_v18, %v986_v21  ;;  %2566 = vrsqrt.f32 %v3508_v9  ;;  %v1305_v21 = vld [vmem:[%s3049_s12 + $0xc0] sm:$0xff] }
 0x19a   : > { %v976_v39 = vsel %vm975_vm10, %v3373_v12, %v974_v49  ;;  %v995_v45 = vmul.f32 %v2549_v60, %v3387_v22  ;;  %vm996_vm12 = vcmp.eq.f32.partialorder %v3387_v22, inf  ;;  %vm998_vm13 = vcmp.eq.f32.partialorder %v3387_v22, 0.0  ;;  %v2257_v29 = vpop.f32.mrf.mxu0 }
 0x19b   : > { %v3525_v20 = vpop.eup %2556  ;;  %1812 = vst [vmem:[%s3215_s21 + $0x90] sm:$0xff] %v1566_v26  ;;  %v979_v14 = vsel %vm977_vm11, %v978_v28, %v976_v39  ;;  %2568 = vrsqrt.f32 %v3518_v50  ;;  %v3531_v24 = vpop.f32.mrf.mxu1  ;;  %v1581_v34 = vadd.f32 %v3384_v52, %v1366_v36  ;;  %v999_v38 = vand.u32 2147483648, %v3387_v22 }
 0x19c   : > { %v1365_v12 = vmul.f32 %v1301_v32, %v979_v14  ;;  %v997_v51 = vsel %vm996_vm12, %v3387_v22, %v995_v45  ;;  %v3537_v30 = vpop.eup %2558  ;;  %v3539_v57 = vadd.f32 1e-08, %v674_v31  ;;  %v988_v60 = vmul.f32 %v2551_v7, %v3402_v33  ;;  %v684_v61 = vpop.f32.mrf.mxu0 }
 0x19d   : > { %vm989_vm14 = vcmp.eq.f32.partialorder %v3402_v33, inf  ;;  %vm991_vm15 = vcmp.eq.f32.partialorder %v3402_v33, 0.0  ;;  %v3544_v52 = vpop.f32.mrf.mxu1  ;;  %1815 = vst [vmem:[%s3215_s21 + $0xa8] sm:$0xff] %v1581_v34  ;;  %v1000_v0 = vsel %vm998_vm13, %v999_v38, %v997_v51  ;;  %v992_v56 = vand.u32 2147483648, %v3402_v33  ;;  %v1308_v51 = vld [vmem:[%s3049_s12 + $0xd8] sm:$0xff] }
 0x19e   : > { %v1576_v4 = vadd.f32 %v3399_v54, %v1365_v12  ;;  %v3552_v53 = vadd.f32 1e-08, %v2257_v29  ;;  %v3554_v2 = vpop.eup %2560  ;;  %v1368_v7 = vmul.f32 %v1304_v58, %v1000_v0  ;;  %2570 = vrsqrt.f32 %v3539_v57  ;;  %v2260_v13 = vpop.f32.mrf.mxu0 }
 0x19f   : > { %v990_v3 = vsel %vm989_vm14, %v3402_v33, %v988_v60  ;;  %v1009_v1 = vmul.f32 %v2553_v44, %v3416_v43  ;;  %v3559_v54 = vpop.f32.mrf.mxu1  ;;  %vm1010_vm0 = vcmp.eq.f32.partialorder %v3416_v43, inf  ;;  %vm1012_vm1 = vcmp.eq.f32.partialorder %v3416_v43, 0.0 }
 0x1a0   : > { %1814 = vst [vmem:[%s3215_s21 + $0xa0] sm:$0xff] %v1576_v4  ;;  %v993_v22 = vsel %vm991_vm15, %v992_v56, %v990_v3  ;;  %2572 = vrsqrt.f32 %v3552_v53  ;;  %v1591_v59 = vadd.f32 %v3413_v62, %v1368_v7  ;;  %v1013_v46 = vand.u32 2147483648, %v3416_v43  ;;  %v694_v17 = vpop.f32.mrf.mxu0  ;;  %v1307_v7 = vld [vmem:[%s3049_s12 + $0xd0] sm:$0xff] }
 0x1a1   : > { %v1367_v15 = vmul.f32 %v1303_v5, %v993_v22  ;;  %v1011_v44 = vsel %vm1010_vm0, %v3416_v43, %v1009_v1  ;;  %v3571_v18 = vpop.f32.mrf.mxu1  ;;  %v3573_v33 = vpop.eup %2562  ;;  %v3575_v19 = vadd.f32 1e-08, %v684_v61  ;;  %v1002_v49 = vmul.f32 %v2555_v25, %v3429_v41 }
 0x1a2   : > { %vm1003_vm2 = vcmp.eq.f32.partialorder %v3429_v41, inf  ;;  %vm1005_vm3 = vcmp.eq.f32.partialorder %v3429_v41, 0.0  ;;  %1817 = vst [vmem:[%s3215_s21 + $0xb8] sm:$0xff] %v1591_v59  ;;  %v1014_v26 = vsel %vm1012_vm1, %v1013_v46, %v1011_v44  ;;  %v1006_v43 = vand.u32 2147483648, %v3429_v41  ;;  %v2263_v32 = vpop.f32.mrf.mxu0  ;;  %v1310_v46 = vld [vmem:[%s3049_s12 + $0xe8] sm:$0xff] }
 0x1a3   : > { %v1586_v62 = vadd.f32 %v3425_v6, %v1367_v15  ;;  %v3584_v28 = vadd.f32 1e-08, %v2260_v13  ;;  %v3586_v31 = vpop.f32.mrf.mxu1  ;;  %v1370_v25 = vmul.f32 %v1306_v40, %v1014_v26  ;;  %2574 = vrsqrt.f32 %v3575_v19 }
 0x1a4   : > { %v3588_v36 = vpop.eup %2564  ;;  %v1004_v39 = vsel %vm1003_vm2, %v3429_v41, %v1002_v49  ;;  %v1023_v6 = vmul.f32 %v3525_v20, %v3443_v47  ;;  %vm1024_vm4 = vcmp.eq.f32.partialorder %v3443_v47, inf  ;;  %vm1026_vm5 = vcmp.eq.f32.partialorder %v3443_v47, 0.0  ;;  %v704_v14 = vpop.f32.mrf.mxu0 }
 0x1a5   : > { %1816 = vst [vmem:[%s3215_s21 + $0xb0] sm:$0xff] %v1586_v62  ;;  %v1007_v45 = vsel %vm1005_vm3, %v1006_v43, %v1004_v39  ;;  %2576 = vrsqrt.f32 %v3584_v28  ;;  %v3598_v29 = vpop.f32.mrf.mxu1  ;;  %v1601_v34 = vadd.f32 %v3436_v16, %v1370_v25  ;;  %v1027_v20 = vand.u32 2147483648, %v3443_v47 }
 0x1a6   : > { %v1369_v12 = vmul.f32 %v1305_v21, %v1007_v45  ;;  %v1025_v41 = vsel %vm1024_vm4, %v3443_v47, %v1023_v6  ;;  %v3604_v38 = vpop.eup %2566  ;;  %v3606_v58 = vadd.f32 1e-08, %v694_v17  ;;  %v1016_v60 = vmul.f32 %v3537_v30, %v3453_v10  ;;  %v2266_v16 = vpop.f32.mrf.mxu0 }
 0x1a7   : > { %vm1017_vm6 = vcmp.eq.f32.partialorder %v3453_v10, inf  ;;  %vm1019_vm7 = vcmp.eq.f32.partialorder %v3453_v10, 0.0  ;;  %v3612_v61 = vpop.f32.mrf.mxu1  ;;  %1819 = vst [vmem:[%s3215_s21 + $0xc8] sm:$0xff] %v1601_v34  ;;  %v1028_v56 = vsel %vm1026_vm5, %v1027_v20, %v1025_v41  ;;  %v1020_v5 = vand.u32 2147483648, %v3453_v10  ;;  %v1312_v20 = vld [vmem:[%s3049_s12 + $0xf8] sm:$0xff] }
 0x1a8   : > { %v3614_v4 = vpop.eup %2568  ;;  %v1596_v0 = vadd.f32 %v3449_v27, %v1369_v12  ;;  %v3622_v30 = vadd.f32 1e-08, %v2263_v32  ;;  %v1372_v3 = vmul.f32 %v1308_v51, %v1028_v56  ;;  %2578 = vrsqrt.f32 %v3606_v58  ;;  %v714_v22 = vpop.f32.mrf.mxu0  ;;  %v1309_v32 = vld [vmem:[%s3049_s12 + $0xe0] sm:$0xff] }
 0x1a9   : > { %v1018_v1 = vsel %vm1017_vm6, %v3453_v10, %v1016_v60  ;;  %v1037_v13 = vmul.f32 %v3554_v2, %v3466_v42  ;;  %v3628_v59 = vpop.f32.mrf.mxu1  ;;  %vm1038_vm8 = vcmp.eq.f32.partialorder %v3466_v42, inf  ;;  %vm1040_vm9 = vcmp.eq.f32.partialorder %v3466_v42, 0.0 }
 0x1aa   : > { %1818 = vst [vmem:[%s3215_s21 + $0xc0] sm:$0xff] %v1596_v0  ;;  %v1021_v47 = vsel %vm1019_vm7, %v1020_v5, %v1018_v1  ;;  %2580 = vrsqrt.f32 %v3622_v30  ;;  %v1611_v27 = vadd.f32 %v3463_v37, %v1372_v3  ;;  %v1041_v44 = vand.u32 2147483648, %v3466_v42  ;;  %v2269_v40 = vpop.f32.mrf.mxu0  ;;  %v1311_v1 = vld [vmem:[%s3049_s12 + $0xf0] sm:$0xff] }
 0x1ab   : > { %v1371_v15 = vmul.f32 %v1307_v7, %v1021_v47  ;;  %v1039_v2 = vsel %vm1038_vm8, %v3466_v42, %v1037_v13  ;;  %v3640_v17 = vpop.f32.mrf.mxu1  ;;  %v3642_v10 = vpop.eup %2570  ;;  %v3644_v49 = vadd.f32 1e-08, %v704_v14  ;;  %v1030_v62 = vmul.f32 %v3573_v33, %v3479_v63 }
 0x1ac   : > { %vm1031_vm10 = vcmp.eq.f32.partialorder %v3479_v63, inf  ;;  %vm1033_vm11 = vcmp.eq.f32.partialorder %v3479_v63, 0.0  ;;  %1821 = vst [vmem:[%s3215_s21 + $0xd8] sm:$0xff] %v1611_v27  ;;  %v1042_v43 = vsel %vm1040_vm9, %v1041_v44, %v1039_v2  ;;  %v1034_v21 = vand.u32 2147483648, %v3479_v63  ;;  %v724_v39 = vpop.f32.mrf.mxu0  ;;  %v1314_v44 = vld [vmem:[%s3049_s12 + $0x108] sm:$0xff] }
 0x1ad   : > { %v3650_v37 = vpop.eup %2572  ;;  %v1606_v26 = vadd.f32 %v3474_v55, %v1371_v15  ;;  %v3658_v25 = vadd.f32 1e-08, %v2266_v16  ;;  %v3660_v33 = vpop.f32.mrf.mxu1  ;;  %v1374_v6 = vmul.f32 %v1310_v46, %v1042_v43  ;;  %2582 = vrsqrt.f32 %v3644_v49 }
 0x1ae   : > { %v1032_v45 = vsel %vm1031_vm10, %v3479_v63, %v1030_v62  ;;  %v1051_v55 = vmul.f32 %v3588_v36, %v3492_v8  ;;  %vm1052_vm12 = vcmp.eq.f32.partialorder %v3492_v8, inf  ;;  %vm1054_vm13 = vcmp.eq.f32.partialorder %v3492_v8, 0.0  ;;  %v2272_v14 = vpop.f32.mrf.mxu0 }
 0x1af   : > { %1820 = vst [vmem:[%s3215_s21 + $0xd0] sm:$0xff] %v1606_v26  ;;  %v1035_v42 = vsel %vm1033_vm11, %v1034_v21, %v1032_v45  ;;  %2584 = vrsqrt.f32 %v3658_v25  ;;  %v3670_v34 = vpop.f32.mrf.mxu1  ;;  %v1621_v12 = vadd.f32 %v3483_v48, %v1374_v6  ;;  %v1055_v36 = vand.u32 2147483648, %v3492_v8 }
 0x1b0   : > { %v1373_v41 = vmul.f32 %v1309_v32, %v1035_v42  ;;  %v1053_v63 = vsel %vm1052_vm12, %v3492_v8, %v1051_v55  ;;  %v2575_v51 = vpop.eup %2574  ;;  %v3676_v60 = vadd.f32 1e-08, %v714_v22  ;;  %v1044_v16 = vmul.f32 %v3604_v38, %v3508_v9  ;;  %v734_v0 = vpop.f32.mrf.mxu0 }
 0x1b1   : > { %vm1045_vm14 = vcmp.eq.f32.partialorder %v3508_v9, inf  ;;  %vm1047_vm15 = vcmp.eq.f32.partialorder %v3508_v9, 0.0  ;;  %v3682_v48 = vpop.f32.mrf.mxu1  ;;  %1823 = vst [vmem:[%s3215_s21 + $0xe8] sm:$0xff] %v1621_v12  ;;  %v1056_v7 = vsel %vm1054_vm13, %v1055_v36, %v1053_v63  ;;  %v1048_v3 = vand.u32 2147483648, %v3508_v9  ;;  %v1316_v63 = vld [vmem:[%s3049_s12 + $0x118] sm:$0xff] }
 0x1b2   : > { %v3684_v56 = vpop.eup %2576  ;;  %v1616_v5 = vadd.f32 %v3495_v11, %v1373_v41  ;;  %v3692_v38 = vadd.f32 1e-08, %v2269_v40  ;;  %v1376_v13 = vmul.f32 %v1312_v20, %v1056_v7  ;;  %2586 = vrsqrt.f32 %v3676_v60  ;;  %v2275_v27 = vpop.f32.mrf.mxu0 }
 0x1b3   : > { %v1046_v22 = vsel %vm1045_vm14, %v3508_v9, %v1044_v16  ;;  %v1065_v47 = vmul.f32 %v3614_v4, %v3518_v50  ;;  %vm1066_vm0 = vcmp.eq.f32.partialorder %v3518_v50, inf  ;;  %vm1068_vm1 = vcmp.eq.f32.partialorder %v3518_v50, 0.0  ;;  %v3708_v40 = vpop.f32.mrf.mxu1 }
 0x1b4   : > { %1822 = vst [vmem:[%s3215_s21 + $0xe0] sm:$0xff] %v1616_v5  ;;  %v1049_v8 = vsel %vm1047_vm15, %v1048_v3, %v1046_v22  ;;  %2588 = vrsqrt.f32 %v3692_v38  ;;  %v1631_v11 = vadd.f32 %v3505_v23, %v1376_v13  ;;  %v1069_v4 = vand.u32 2147483648, %v3518_v50  ;;  %v744_v46 = vpop.f32.mrf.mxu0 }
 0x1b5   : > { %v1375_v15 = vmul.f32 %v1311_v1, %v1049_v8  ;;  %v1067_v2 = vsel %vm1066_vm0, %v3518_v50, %v1065_v47  ;;  %v2579_v9 = vpop.eup %2578  ;;  %v3710_v62 = vadd.f32 1e-08, %v724_v39  ;;  %v1058_v26 = vmul.f32 %v3642_v10, %v3539_v57  ;;  %v1313_v39 = vld [vmem:[%s3049_s12 + $0x100] sm:$0xff]  ;;  %v1315_v1 = vld [vmem:[%s3049_s12 + $0x110] sm:$0xff] }
 0x1b6   : > { %vm1059_vm2 = vcmp.eq.f32.partialorder %v3539_v57, inf  ;;  %vm1061_vm3 = vcmp.eq.f32.partialorder %v3539_v57, 0.0  ;;  %1825 = vst [vmem:[%s3215_s21 + $0xf8] sm:$0xff] %v1631_v11  ;;  %v1070_v21 = vsel %vm1068_vm1, %v1069_v4, %v1067_v2  ;;  %v1062_v32 = vand.u32 2147483648, %v3539_v57  ;;  %v2278_v45 = vpop.f32.mrf.mxu0  ;;  %v1318_v2 = vld [vmem:[%s3049_s12 + $0x128] sm:$0xff] }
 0x1b7   : > { %v3716_v23 = vpop.eup %2580  ;;  %v1626_v43 = vadd.f32 %v3520_v35, %v1375_v15  ;;  %v3724_v6 = vadd.f32 1e-08, %v2272_v14  ;;  %v1378_v10 = vmul.f32 %v1314_v44, %v1070_v21  ;;  %2590 = vrsqrt.f32 %v3710_v62  ;;  %v3736_v14 = vpop.f32.mrf.mxu1 }
 0x1b8   : > { %v1060_v55 = vsel %vm1059_vm2, %v3539_v57, %v1058_v26  ;;  %v1079_v42 = vmul.f32 %v3650_v37, %v3552_v53  ;;  %vm1080_vm4 = vcmp.eq.f32.partialorder %v3552_v53, inf  ;;  %vm1082_vm5 = vcmp.eq.f32.partialorder %v3552_v53, 0.0  ;;  %v3734_v50 = vpop.f32.mrf.mxu0 }
 0x1b9   : > { %1824 = vst [vmem:[%s3215_s21 + $0xf0] sm:$0xff] %v1626_v43  ;;  %v1063_v35 = vsel %vm1061_vm3, %v1062_v32, %v1060_v55  ;;  %2592 = vrsqrt.f32 %v3724_v6  ;;  %v1641_v12 = vadd.f32 %v3531_v24, %v1378_v10  ;;  %v1083_v37 = vand.u32 2147483648, %v3552_v53  ;;  %v1317_v32 = vld [vmem:[%s3049_s12 + $0x120] sm:$0xff] }
 0x1ba   : > { %v1377_v57 = vmul.f32 %v1313_v39, %v1063_v35  ;;  %v1081_v41 = vsel %vm1080_vm4, %v3552_v53, %v1079_v42  ;;  %v2583_v36 = vpop.eup %2582  ;;  %v3742_v20 = vadd.f32 1e-08, %v734_v0  ;;  %v1072_v16 = vmul.f32 %v2575_v51, %v3575_v19  ;;  %v3747_v5 = vpop.f32.mrf.mxu0 }
 0x1bb   : > { %vm1073_vm6 = vcmp.eq.f32.partialorder %v3575_v19, inf  ;;  %vm1075_vm7 = vcmp.eq.f32.partialorder %v3575_v19, 0.0  ;;  %1827 = vst [vmem:[%s3215_s21 + $0x108] sm:$0xff] %v1641_v12  ;;  %v1084_v3 = vsel %vm1082_vm5, %v1083_v37, %v1081_v41  ;;  %v1076_v0 = vand.u32 2147483648, %v3575_v19 }
 0x1bc   : > { %v3749_v24 = vpop.eup %2584  ;;  %v1636_v7 = vadd.f32 %v3544_v52, %v1377_v57  ;;  %v3757_v13 = vadd.f32 1e-08, %v2275_v27  ;;  %v1380_v51 = vmul.f32 %v1316_v63, %v1084_v3  ;;  %2594 = vrsqrt.f32 %v3742_v20  ;;  %v3763_v8 = vpop.f32.mrf.mxu0 }
 0x1bd   : > { %v1074_v22 = vsel %vm1073_vm6, %v3575_v19, %v1072_v16  ;;  %v1093_v47 = vmul.f32 %v3684_v56, %v3584_v28  ;;  %v3765_v52 = vpop.f32.mrf.mxu1  ;;  %vm1094_vm8 = vcmp.eq.f32.partialorder %v3584_v28, inf  ;;  %vm1096_vm9 = vcmp.eq.f32.partialorder %v3584_v28, 0.0 }
 0x1be   : > { %1826 = vst [vmem:[%s3215_s21 + $0x100] sm:$0xff] %v1636_v7  ;;  %v1077_v53 = vsel %vm1075_vm7, %v1076_v0, %v1074_v22  ;;  %2596 = vrsqrt.f32 %v3757_v13  ;;  %v1651_v27 = vadd.f32 %v3559_v54, %v1380_v51  ;;  %v1097_v15 = vand.u32 2147483648, %v3584_v28  ;;  %v3777_v4 = vpop.f32.mrf.mxu0 }
 0x1bf   : > { %v1379_v11 = vmul.f32 %v1315_v1, %v1077_v53  ;;  %v1095_v56 = vsel %vm1094_vm8, %v3584_v28, %v1093_v47  ;;  %v2587_v19 = vpop.eup %2586  ;;  %v3779_v44 = vadd.f32 1e-08, %v744_v46  ;;  %v1086_v26 = vmul.f32 %v2579_v9, %v3606_v58  ;;  %v3794_v9 = vpop.f32.mrf.mxu1 }
 0x1c0   : > { %vm1087_vm10 = vcmp.eq.f32.partialorder %v3606_v58, inf  ;;  %vm1089_vm11 = vcmp.eq.f32.partialorder %v3606_v58, 0.0  ;;  %1829 = vst [vmem:[%s3215_s21 + $0x118] sm:$0xff] %v1651_v27  ;;  %v1098_v21 = vsel %vm1096_vm9, %v1097_v15, %v1095_v56  ;;  %v1090_v28 = vand.u32 2147483648, %v3606_v58  ;;  %v3792_v46 = vpop.f32.mrf.mxu0  ;;  %v1322_v27 = vld [vmem:[%s3049_s12 + $0x148] sm:$0xff] }
 0x1c1   : > { %v3784_v54 = vpop.eup %2588  ;;  %v1646_v43 = vadd.f32 %v3571_v18, %v1379_v11  ;;  %v3790_v39 = vadd.f32 1e-08, %v2278_v45  ;;  %v1382_v10 = vmul.f32 %v1318_v2, %v1098_v21  ;;  %2598 = vrsqrt.f32 %v3779_v44 }
 0x1c2   : > { %v1088_v55 = vsel %vm1087_vm10, %v3606_v58, %v1086_v26  ;;  %v1107_v42 = vmul.f32 %v3716_v23, %v3622_v30  ;;  %vm1108_vm12 = vcmp.eq.f32.partialorder %v3622_v30, inf  ;;  %vm1110_vm13 = vcmp.eq.f32.partialorder %v3622_v30, 0.0  ;;  %v3804_v45 = vpop.f32.mrf.mxu0  ;;  %v1320_v23 = vld [vmem:[%s3049_s12 + $0x138] sm:$0xff] }
 0x1c3   : > { %1828 = vst [vmem:[%s3215_s21 + $0x110] sm:$0xff] %v1646_v43  ;;  %v1091_v18 = vsel %vm1089_vm11, %v1090_v28, %v1088_v55  ;;  %2600 = vrsqrt.f32 %v3790_v39  ;;  %v1661_v35 = vadd.f32 %v3586_v31, %v1382_v10  ;;  %v1111_v57 = vand.u32 2147483648, %v3622_v30  ;;  %v3818_v31 = vpop.f32.mrf.mxu1  ;;  %v1321_v28 = vld [vmem:[%s3049_s12 + $0x140] sm:$0xff] }
 0x1c4   : > { %v1381_v12 = vmul.f32 %v1317_v32, %v1091_v18  ;;  %v1109_v58 = vsel %vm1108_vm12, %v3622_v30, %v1107_v42  ;;  %v2591_v41 = vpop.eup %2590  ;;  %v3811_v37 = vadd.f32 1e-08, %v3734_v50  ;;  %v1100_v63 = vmul.f32 %v2583_v36, %v3644_v49  ;;  %v3816_v16 = vpop.f32.mrf.mxu0  ;;  %v1319_v36 = vld [vmem:[%s3049_s12 + $0x130] sm:$0xff]  ;;  %v1324_v18 = vld [vmem:[%s3049_s12 + $0x158] sm:$0xff] }
 0x1c5   : > { %vm1101_vm14 = vcmp.eq.f32.partialorder %v3644_v49, inf  ;;  %vm1103_vm15 = vcmp.eq.f32.partialorder %v3644_v49, 0.0  ;;  %1831 = vst [vmem:[%s3215_s21 + $0x128] sm:$0xff] %v1661_v35  ;;  %v1112_v50 = vsel %vm1110_vm13, %v1111_v57, %v1109_v58  ;;  %v1104_v0 = vand.u32 2147483648, %v3644_v49 }
 0x1c6   : > { %v3820_v7 = vpop.eup %2592  ;;  %v1656_v3 = vadd.f32 %v3598_v29, %v1381_v12  ;;  %v3829_v1 = vadd.f32 1e-08, %v3747_v5  ;;  %v1384_v51 = vmul.f32 %v1320_v23, %v1112_v50  ;;  %2602 = vrsqrt.f32 %v3811_v37  ;;  %v3843_v11 = vpop.f32.mrf.mxu0 }
 0x1c7   : > { %v1102_v22 = vsel %vm1101_vm14, %v3644_v49, %v1100_v63  ;;  %v1121_v47 = vmul.f32 %v3749_v24, %v3658_v25  ;;  %vm1122_vm0 = vcmp.eq.f32.partialorder %v3658_v25, inf  ;;  %vm1124_vm1 = vcmp.eq.f32.partialorder %v3658_v25, 0.0  ;;  %v3845_v24 = vpop.f32.mrf.mxu1 }
 0x1c8   : > { %1830 = vst [vmem:[%s3215_s21 + $0x120] sm:$0xff] %v1656_v3  ;;  %v1105_v29 = vsel %vm1103_vm15, %v1104_v0, %v1102_v22  ;;  %2604 = vrsqrt.f32 %v3829_v1  ;;  %v1671_v30 = vadd.f32 %v3612_v61, %v1384_v51  ;;  %v1125_v49 = vand.u32 2147483648, %v3658_v25  ;;  %v1323_v3 = vld [vmem:[%s3049_s12 + $0x150] sm:$0xff]  ;;  %v1326_v22 = vld [vmem:[%s3049_s12 + $0x168] sm:$0xff] }
 0x1c9   : > { %v1383_v5 = vmul.f32 %v1319_v36, %v1105_v29  ;;  %v1123_v53 = vsel %vm1122_vm0, %v3658_v25, %v1121_v47  ;;  %v2595_v56 = vpop.eup %2594  ;;  %v3848_v15 = vadd.f32 1e-08, %v3763_v8  ;;  %v1114_v2 = vmul.f32 %v2587_v19, %v3676_v60  ;;  %v3872_v25 = vpop.f32.mrf.mxu0 }
 0x1ca   : > { %vm1115_vm2 = vcmp.eq.f32.partialorder %v3676_v60, inf  ;;  %vm1117_vm3 = vcmp.eq.f32.partialorder %v3676_v60, 0.0  ;;  %1833 = vst [vmem:[%s3215_s21 + $0x138] sm:$0xff] %v1671_v30  ;;  %v1126_v43 = vsel %vm1124_vm1, %v1125_v49, %v1123_v53  ;;  %v1118_v21 = vand.u32 2147483648, %v3676_v60  ;;  %v1325_v49 = vld [vmem:[%s3049_s12 + $0x160] sm:$0xff] }
 0x1cb   : > { %v3853_v61 = vpop.eup %2596  ;;  %v1666_v26 = vadd.f32 %v3628_v59, %v1383_v5  ;;  %v3862_v8 = vadd.f32 1e-08, %v3777_v4  ;;  %v1386_v19 = vmul.f32 %v1322_v27, %v1126_v43  ;;  %2606 = vrsqrt.f32 %v3848_v15  ;;  %v3874_v4 = vpop.f32.mrf.mxu1 }
 0x1cc   : > { %v1116_v32 = vsel %vm1115_vm2, %v3676_v60, %v1114_v2  ;;  %v1135_v10 = vmul.f32 %v3784_v54, %v3692_v38  ;;  %vm1136_vm4 = vcmp.eq.f32.partialorder %v3692_v38, inf  ;;  %vm1138_vm5 = vcmp.eq.f32.partialorder %v3692_v38, 0.0  ;;  %v2293_v36 = vpop.f32.mrf.mxu0 }
 0x1cd   : > { %1832 = vst [vmem:[%s3215_s21 + $0x130] sm:$0xff] %v1666_v26  ;;  %v1119_v59 = vsel %vm1117_vm3, %v1118_v21, %v1116_v32  ;;  %2608 = vrsqrt.f32 %v3862_v8  ;;  %v1681_v55 = vadd.f32 %v3640_v17, %v1386_v19  ;;  %v1139_v54 = vand.u32 2147483648, %v3692_v38  ;;  %v1328_v19 = vld [vmem:[%s3049_s12 + $0x178] sm:$0xff] }
 0x1ce   : > { %v1385_v60 = vmul.f32 %v1321_v28, %v1119_v59  ;;  %v1137_v42 = vsel %vm1136_vm4, %v3692_v38, %v1135_v10  ;;  %v2599_v35 = vpop.eup %2598  ;;  %v3881_v12 = vadd.f32 1e-08, %v3792_v46  ;;  %v1128_v58 = vmul.f32 %v2591_v41, %v3710_v62 }
 0x1cf   : > { %vm1129_vm6 = vcmp.eq.f32.partialorder %v3710_v62, inf  ;;  %vm1131_vm7 = vcmp.eq.f32.partialorder %v3710_v62, 0.0  ;;  %1835 = vst [vmem:[%s3215_s21 + $0x148] sm:$0xff] %v1681_v55  ;;  %v1140_v23 = vsel %vm1138_vm5, %v1139_v54, %v1137_v42  ;;  %v1132_v63 = vand.u32 2147483648, %v3710_v62  ;;  %v1327_v54 = vld [vmem:[%s3049_s12 + $0x170] sm:$0xff] }
 0x1d0   : > { %v3886_v57 = vpop.eup %2600  ;;  %v1676_v17 = vadd.f32 %v3660_v33, %v1385_v60  ;;  %v3895_v46 = vadd.f32 1e-08, %v3804_v45  ;;  %v1388_v41 = vmul.f32 %v1324_v18, %v1140_v23  ;;  %2610 = vrsqrt.f32 %v3881_v12  ;;  %v3901_v33 = vpop.f32.mrf.mxu1 }
 0x1d1   : > { %v1130_v50 = vsel %vm1129_vm6, %v3710_v62, %v1128_v58  ;;  %v1149_v0 = vmul.f32 %v3820_v7, %v3724_v6  ;;  %vm1150_vm8 = vcmp.eq.f32.partialorder %v3724_v6, inf  ;;  %vm1152_vm9 = vcmp.eq.f32.partialorder %v3724_v6, 0.0 }
 0x1d2   : > { %1834 = vst [vmem:[%s3215_s21 + $0x140] sm:$0xff] %v1676_v17  ;;  %v1133_v38 = vsel %vm1131_vm7, %v1132_v63, %v1130_v50  ;;  %2612 = vrsqrt.f32 %v3895_v46  ;;  %v1691_v45 = vadd.f32 %v3670_v34, %v1388_v41  ;;  %v1153_v7 = vand.u32 2147483648, %v3724_v6 }
 0x1d3   : > { %v1387_v51 = vmul.f32 %v1323_v3, %v1133_v38  ;;  %v1151_v62 = vsel %vm1150_vm8, %v3724_v6, %v1149_v0  ;;  %v2603_v47 = vpop.eup %2602  ;;  %v3912_v29 = vadd.f32 1e-08, %v3816_v16  ;;  %v1142_v30 = vmul.f32 %v2595_v56, %v3742_v20  ;;  %v804_v16 = vpop.f32.mrf.mxu0  ;;  %v1330_v3 = vld [vmem:[%s3049_s12 + $0x188] sm:$0xff] }
 0x1d4   : > { %vm1143_vm10 = vcmp.eq.f32.partialorder %v3742_v20, inf  ;;  %vm1145_vm11 = vcmp.eq.f32.partialorder %v3742_v20, 0.0  ;;  %1837 = vst [vmem:[%s3215_s21 + $0x158] sm:$0xff] %v1691_v45  ;;  %v1154_v53 = vsel %vm1152_vm9, %v1153_v7, %v1151_v62  ;;  %v1146_v6 = vand.u32 2147483648, %v3742_v20  ;;  %v3926_v56 = vpop.f32.mrf.mxu1  ;;  %v1329_v62 = vld [vmem:[%s3049_s12 + $0x180] sm:$0xff] }
 0x1d5   : > { %v3917_v5 = vpop.eup %2604  ;;  %v1686_v34 = vadd.f32 %v3682_v48, %v1387_v51  ;;  %v3924_v27 = vadd.f32 1e-08, %v3843_v11  ;;  %v1390_v2 = vmul.f32 %v1326_v22, %v1154_v53  ;;  %2614 = vrsqrt.f32 %v3912_v29  ;;  %v2296_v59 = vpop.f32.mrf.mxu0 }
 0x1d6   : > { %v1144_v26 = vsel %vm1143_vm10, %v3742_v20, %v1142_v30  ;;  %v1163_v43 = vmul.f32 %v3853_v61, %v3757_v13  ;;  %vm1164_vm12 = vcmp.eq.f32.partialorder %v3757_v13, inf  ;;  %vm1166_vm13 = vcmp.eq.f32.partialorder %v3757_v13, 0.0 }
 0x1d7   : > { %1836 = vst [vmem:[%s3215_s21 + $0x150] sm:$0xff] %v1686_v34  ;;  %v1147_v48 = vsel %vm1145_vm11, %v1146_v6, %v1144_v26  ;;  %2616 = vrsqrt.f32 %v3924_v27  ;;  %v1701_v11 = vadd.f32 %v3708_v40, %v1390_v2  ;;  %v1167_v20 = vand.u32 2147483648, %v3757_v13  ;;  %v3946_v40 = vpop.f32.mrf.mxu1  ;;  %v814_v41 = vpop.f32.mrf.mxu0 }
 0x1d8   : > { %v1389_v21 = vmul.f32 %v1325_v49, %v1147_v48  ;;  %v1165_v28 = vsel %vm1164_vm12, %v3757_v13, %v1163_v43  ;;  %v2607_v32 = vpop.eup %2606  ;;  %v3941_v61 = vadd.f32 1e-08, %v3872_v25  ;;  %v1156_v10 = vmul.f32 %v2599_v35, %v3779_v44  ;;  %v1332_v49 = vld [vmem:[%s3049_s12 + $0x198] sm:$0xff] }
 0x1d9   : > { %vm1157_vm14 = vcmp.eq.f32.partialorder %v3779_v44, inf  ;;  %vm1159_vm15 = vcmp.eq.f32.partialorder %v3779_v44, 0.0  ;;  %1839 = vst [vmem:[%s3215_s21 + $0x168] sm:$0xff] %v1701_v11  ;;  %v1168_v42 = vsel %vm1166_vm13, %v1167_v20, %v1165_v28  ;;  %v1160_v25 = vand.u32 2147483648, %v3779_v44 }
 0x1da   : > { %v3948_v55 = vpop.eup %2608  ;;  %v1696_v60 = vadd.f32 %v3736_v14, %v1389_v21  ;;  %v3956_v18 = vadd.f32 1e-08, %v2293_v36  ;;  %v1392_v35 = vmul.f32 %v1328_v19, %v1168_v42  ;;  %2618 = vrsqrt.f32 %v3941_v61  ;;  %v1331_v21 = vld [vmem:[%s3049_s12 + $0x190] sm:$0xff]  ;;  %v1334_v42 = vld [vmem:[%s3049_s12 + $0x1a8] sm:$0xff] }
 0x1db   : > { %v1158_v58 = vsel %vm1157_vm14, %v3779_v44, %v1156_v10  ;;  %v1177_v17 = vmul.f32 %v3886_v57, %v3790_v39  ;;  %vm1178_vm0 = vcmp.eq.f32.partialorder %v3790_v39, inf  ;;  %vm1180_vm1 = vcmp.eq.f32.partialorder %v3790_v39, 0.0  ;;  %v3970_v57 = vpop.f32.mrf.mxu1 }
 0x1dc   : > { %1838 = vst [vmem:[%s3215_s21 + $0x160] sm:$0xff] %v1696_v60  ;;  %v1161_v23 = vsel %vm1159_vm15, %v1160_v25, %v1158_v58  ;;  %2620 = vrsqrt.f32 %v3956_v18  ;;  %v1711_v14 = vadd.f32 %v3765_v52, %v1392_v35  ;;  %v1181_v44 = vand.u32 2147483648, %v3790_v39 }
 0x1dd   : > { %v1391_v13 = vmul.f32 %v1327_v54, %v1161_v23  ;;  %v1179_v63 = vsel %vm1178_vm0, %v3790_v39, %v1177_v17  ;;  %v2611_v50 = vpop.eup %2610  ;;  %v3972_v0 = vadd.f32 1e-08, %v804_v16  ;;  %v1170_v36 = vmul.f32 %v2603_v47, %v3811_v37  ;;  %v2299_v39 = vpop.f32.mrf.mxu0 }
 0x1de   : > { %vm1171_vm2 = vcmp.eq.f32.partialorder %v3811_v37, inf  ;;  %vm1173_vm3 = vcmp.eq.f32.partialorder %v3811_v37, 0.0  ;;  %1841 = vst [vmem:[%s3215_s21 + $0x178] sm:$0xff] %v1711_v14  ;;  %v1182_v45 = vsel %vm1180_vm1, %v1181_v44, %v1179_v63  ;;  %v1174_v51 = vand.u32 2147483648, %v3811_v37 }
 0x1df   : > { %v2613_v52 = vpop.eup %2612  ;;  %v1706_v38 = vadd.f32 %v3794_v9, %v1391_v13  ;;  %v3983_v7 = vadd.f32 1e-08, %v2296_v59  ;;  %v1394_v22 = vmul.f32 %v1330_v3, %v1182_v45  ;;  %2622 = vrsqrt.f32 %v3972_v0  ;;  %v3993_v9 = vpop.f32.mrf.mxu1 }
 0x1e0   : > { %v1172_v47 = vsel %vm1171_vm2, %v3811_v37, %v1170_v36  ;;  %v1191_v30 = vmul.f32 %v3917_v5, %v3829_v1  ;;  %vm1192_vm4 = vcmp.eq.f32.partialorder %v3829_v1, inf  ;;  %vm1194_vm5 = vcmp.eq.f32.partialorder %v3829_v1, 0.0  ;;  %v824_v10 = vpop.f32.mrf.mxu0 }
 0x1e1   : > { %1840 = vst [vmem:[%s3215_s21 + $0x170] sm:$0xff] %v1706_v38  ;;  %v1175_v34 = vsel %vm1173_vm3, %v1174_v51, %v1172_v47  ;;  %2624 = vrsqrt.f32 %v3983_v7  ;;  %v1721_v53 = vadd.f32 %v3818_v31, %v1394_v22  ;;  %v1195_v5 = vand.u32 2147483648, %v3829_v1  ;;  %v4016_v59 = vpop.f32.mrf.mxu1 }
 0x1e2   : > { %v1393_v6 = vmul.f32 %v1329_v62, %v1175_v34  ;;  %v1193_v37 = vsel %vm1192_vm4, %v3829_v1, %v1191_v30  ;;  %v2615_v16 = vpop.eup %2614  ;;  %v3999_v2 = vadd.f32 1e-08, %v814_v41  ;;  %v1184_v26 = vmul.f32 %v2607_v32, %v3848_v15  ;;  %v1335_v62 = vld [vmem:[%s3049_s12 + $0x1b0] sm:$0xff] }
 0x1e3   : > { %vm1185_vm6 = vcmp.eq.f32.partialorder %v3848_v15, inf  ;;  %vm1187_vm7 = vcmp.eq.f32.partialorder %v3848_v15, 0.0  ;;  %1843 = vst [vmem:[%s3215_s21 + $0x188] sm:$0xff] %v1721_v53  ;;  %v1196_v48 = vsel %vm1194_vm5, %v1195_v5, %v1193_v37  ;;  %v1188_v11 = vand.u32 2147483648, %v3848_v15  ;;  %v4036_v13 = vpop.f32.mrf.mxu1  ;;  %v1338_v37 = vld [vmem:[%s3049_s12 + $0x1c8] sm:$0xff] }
 0x1e4   : > { %v2617_v43 = vpop.eup %2616  ;;  %v1716_v31 = vadd.f32 %v3845_v24, %v1393_v6  ;;  %v4010_v28 = vadd.f32 1e-08, %v2299_v39  ;;  %v1396_v20 = vmul.f32 %v1332_v49, %v1196_v48  ;;  %2626 = vrsqrt.f32 %v3999_v2 }
 0x1e5   : > { %v1186_v19 = vsel %vm1185_vm6, %v3848_v15, %v1184_v26  ;;  %v1205_v32 = vmul.f32 %v3948_v55, %v3862_v8  ;;  %vm1206_vm8 = vcmp.eq.f32.partialorder %v3862_v8, inf  ;;  %vm1208_vm9 = vcmp.eq.f32.partialorder %v3862_v8, 0.0  ;;  %v1337_v26 = vld [vmem:[%s3049_s12 + $0x1c0] sm:$0xff] }
 0x1e6   : > { %1842 = vst [vmem:[%s3215_s21 + $0x180] sm:$0xff] %v1716_v31  ;;  %v1189_v1 = vsel %vm1187_vm7, %v1188_v11, %v1186_v19  ;;  %2628 = vrsqrt.f32 %v4010_v28  ;;  %v1731_v24 = vadd.f32 %v3874_v4, %v1396_v20  ;;  %v1209_v55 = vand.u32 2147483648, %v3862_v8 }
 0x1e7   : > { %v1395_v60 = vmul.f32 %v1331_v21, %v1189_v1  ;;  %v1207_v15 = vsel %vm1206_vm8, %v3862_v8, %v1205_v32  ;;  %v2619_v25 = vpop.eup %2618  ;;  %v4026_v54 = vadd.f32 1e-08, %v824_v10  ;;  %v1198_v35 = vmul.f32 %v2611_v50, %v3881_v12  ;;  %v1333_v8 = vld [vmem:[%s3049_s12 + $0x1a0] sm:$0xff]  ;;  %v1336_v50 = vld [vmem:[%s3049_s12 + $0x1b8] sm:$0xff] }
 0x1e8   : > { %vm1199_vm10 = vcmp.eq.f32.partialorder %v3881_v12, inf  ;;  %vm1201_vm11 = vcmp.eq.f32.partialorder %v3881_v12, 0.0  ;;  %1845 = vst [vmem:[%s3215_s21 + $0x198] sm:$0xff] %v1731_v24  ;;  %v1210_v17 = vsel %vm1208_vm9, %v1209_v55, %v1207_v15  ;;  %v1202_v23 = vand.u32 2147483648, %v3881_v12  ;;  %v1340_v10 = vld [vmem:[%s3049_s12 + $0x1d8] sm:$0xff]  ;;  %v1339_v15 = vld [vmem:[%s3049_s12 + $0x1d0] sm:$0xff] }
 0x1e9   : > { %v2621_v58 = vpop.eup %2620  ;;  %v1726_v4 = vadd.f32 %v3901_v33, %v1395_v60  ;;  %v1219_v14 = vmul.f32 %v2613_v52, %v3895_v46  ;;  %v1398_v63 = vmul.f32 %v1334_v42, %v1210_v17  ;;  %2630 = vrsqrt.f32 %v4026_v54 }
 0x1ea   : > { %v1200_v44 = vsel %vm1199_vm10, %v3881_v12, %v1198_v35  ;;  %vm1220_vm12 = vcmp.eq.f32.partialorder %v3895_v46, inf  ;;  %vm1222_vm13 = vcmp.eq.f32.partialorder %v3895_v46, 0.0  ;;  %v1223_v41 = vand.u32 2147483648, %v3895_v46 }
 0x1eb   : > { %1844 = vst [vmem:[%s3215_s21 + $0x190] sm:$0xff] %v1726_v4  ;;  %v1203_v3 = vsel %vm1201_vm11, %v1202_v23, %v1200_v44  ;;  %v1221_v33 = vsel %vm1220_vm12, %v3895_v46, %v1219_v14  ;;  %v1741_v36 = vadd.f32 %v3926_v56, %v1398_v63  ;;  %v1212_v38 = vmul.f32 %v2615_v16, %v3912_v29  ;;  %v2421_v46 = vpop.f32.mrf.mxu1  ;;  %v1342_v23 = vld [vmem:[%s3049_s12 + $0x1e8] sm:$0xff]  ;;  %v1341_v44 = vld [vmem:[%s3049_s12 + $0x1e0] sm:$0xff] }
 0x1ec   : > { %v1397_v52 = vmul.f32 %v1333_v8, %v1203_v3  ;;  %vm1213_vm14 = vcmp.eq.f32.partialorder %v3912_v29, inf  ;;  %v2623_v12 = vpop.eup %2622  ;;  %v1224_v45 = vsel %vm1222_vm13, %v1223_v41, %v1221_v33  ;;  %vm1215_vm15 = vcmp.eq.f32.partialorder %v3912_v29, 0.0 }
 0x1ed   : > { %v1216_v51 = vand.u32 2147483648, %v3912_v29  ;;  %v1233_v22 = vmul.f32 %v2617_v43, %v3924_v27  ;;  %1847 = vst [vmem:[%s3215_s21 + $0x1a8] sm:$0xff] %v1741_v36  ;;  %v1400_v30 = vmul.f32 %v1336_v50, %v1224_v45  ;;  %v1214_v34 = vsel %vm1213_vm14, %v3912_v29, %v1212_v38 }
 0x1ee   : > { %v2625_v47 = vpop.eup %2624  ;;  %v1736_v56 = vadd.f32 %v3946_v40, %v1397_v52  ;;  %vm1234_vm0 = vcmp.eq.f32.partialorder %v3924_v27, inf  ;;  %vm1236_vm1 = vcmp.eq.f32.partialorder %v3924_v27, 0.0  ;;  %v1237_v6 = vand.u32 2147483648, %v3924_v27 }
 0x1ef   : > { %v1217_v39 = vsel %vm1215_vm15, %v1216_v51, %v1214_v34  ;;  %v1235_v53 = vsel %vm1234_vm0, %v3924_v27, %v1233_v22  ;;  %v1751_v5 = vadd.f32 %v3970_v57, %v1400_v30  ;;  %v1226_v40 = vmul.f32 %v2619_v25, %v3941_v61  ;;  %v1765_v27 = vpop.f32.mrf.mxu1 }
 0x1f0   : > { %1846 = vst [vmem:[%s3215_s21 + $0x1a0] sm:$0xff] %v1736_v56  ;;  %v1399_v49 = vmul.f32 %v1335_v62, %v1217_v39  ;;  %vm1227_vm2 = vcmp.eq.f32.partialorder %v3941_v61, inf  ;;  %v1238_v29 = vsel %vm1236_vm1, %v1237_v6, %v1235_v53  ;;  %vm1229_vm3 = vcmp.eq.f32.partialorder %v3941_v61, 0.0 }
 0x1f1   : > { %v1230_v16 = vand.u32 2147483648, %v3941_v61  ;;  %v1247_v43 = vmul.f32 %v2621_v58, %v3956_v18  ;;  %v2627_v31 = vpop.eup %2626  ;;  %1849 = vst [vmem:[%s3215_s21 + $0x1b8] sm:$0xff] %v1751_v5  ;;  %v1402_v48 = vmul.f32 %v1338_v37, %v1238_v29  ;;  %v1228_v11 = vsel %vm1227_vm2, %v3941_v61, %v1226_v40 }
 0x1f2   : > { %v1746_v57 = vadd.f32 %v3993_v9, %v1399_v49  ;;  %vm1248_vm4 = vcmp.eq.f32.partialorder %v3956_v18, inf  ;;  %vm1250_vm5 = vcmp.eq.f32.partialorder %v3956_v18, 0.0  ;;  %v1251_v32 = vand.u32 2147483648, %v3956_v18 }
 0x1f3   : > { %v2629_v21 = vpop.eup %2628  ;;  %v1231_v20 = vsel %vm1229_vm3, %v1230_v16, %v1228_v11  ;;  %v1249_v19 = vsel %vm1248_vm4, %v3956_v18, %v1247_v43  ;;  %v1761_v1 = vadd.f32 %v4016_v59, %v1402_v48  ;;  %v1240_v24 = vmul.f32 %v2623_v12, %v3972_v0  ;;  %v2424_v18 = vpop.f32.mrf.mxu1  ;;  %v1344_v12 = vld [vmem:[%s3049_s12 + $0x1f8] sm:$0xff] }
 0x1f4   : > { %1848 = vst [vmem:[%s3215_s21 + $0x1b0] sm:$0xff] %v1746_v57  ;;  %v1401_v9 = vmul.f32 %v1337_v26, %v1231_v20  ;;  %vm1241_vm6 = vcmp.eq.f32.partialorder %v3972_v0, inf  ;;  %v1252_v61 = vsel %vm1250_vm5, %v1251_v32, %v1249_v19  ;;  %vm1243_vm7 = vcmp.eq.f32.partialorder %v3972_v0, 0.0 }
 0x1f5   : > { %v1244_v60 = vand.u32 2147483648, %v3972_v0  ;;  %v1261_v55 = vmul.f32 %v2625_v47, %v3983_v7  ;;  %1851 = vst [vmem:[%s3215_s21 + $0x1c8] sm:$0xff] %v1761_v1  ;;  %v1404_v59 = vmul.f32 %v1340_v10, %v1252_v61  ;;  %v1242_v25 = vsel %vm1241_vm6, %v3972_v0, %v1240_v24  ;;  %v1775_v3 = vpop.f32.mrf.mxu1  ;;  %v1343_v47 = vld [vmem:[%s3049_s12 + $0x1f0] sm:$0xff] }
 0x1f6   : > { %v1756_v42 = vadd.f32 %v4036_v13, %v1401_v9  ;;  %vm1262_vm8 = vcmp.eq.f32.partialorder %v3983_v7, inf  ;;  %v2631_v35 = vpop.eup %2630  ;;  %vm1264_vm9 = vcmp.eq.f32.partialorder %v3983_v7, 0.0  ;;  %v1265_v17 = vand.u32 2147483648, %v3983_v7 }
 0x1f7   : > { %v1245_v58 = vsel %vm1243_vm7, %v1244_v60, %v1242_v25  ;;  %v1263_v4 = vsel %vm1262_vm8, %v3983_v7, %v1261_v55  ;;  %v1771_v8 = vadd.f32 %v2421_v46, %v1404_v59  ;;  %v1254_v13 = vmul.f32 %v2627_v31, %v3999_v2  ;;  %v2427_v22 = vpop.f32.mrf.mxu1 }
 0x1f8   : > { %1850 = vst [vmem:[%s3215_s21 + $0x1c0] sm:$0xff] %v1756_v42  ;;  %v1403_v14 = vmul.f32 %v1339_v15, %v1245_v58  ;;  %vm1255_vm10 = vcmp.eq.f32.partialorder %v3999_v2, inf  ;;  %v1266_v0 = vsel %vm1264_vm9, %v1265_v17, %v1263_v4  ;;  %vm1257_vm11 = vcmp.eq.f32.partialorder %v3999_v2, 0.0 }
 0x1f9   : > { %v1258_v63 = vand.u32 2147483648, %v3999_v2  ;;  %v1275_v33 = vmul.f32 %v2629_v21, %v4010_v28  ;;  %1853 = vst [vmem:[%s3215_s21 + $0x1d8] sm:$0xff] %v1771_v8  ;;  %v1406_v41 = vmul.f32 %v1342_v23, %v1266_v0  ;;  %v1256_v50 = vsel %vm1255_vm10, %v3999_v2, %v1254_v13  ;;  %v1785_v6 = vpop.f32.mrf.mxu1 }
 0x1fa   : > { %v1766_v7 = vadd.f32 %v1765_v27, %v1403_v14  ;;  %vm1276_vm12 = vcmp.eq.f32.partialorder %v4010_v28, inf  ;;  %v1279_v38 = vand.u32 2147483648, %v4010_v28  ;;  %vm1278_vm13 = vcmp.eq.f32.partialorder %v4010_v28, 0.0 }
 0x1fb   : > { %v1259_v36 = vsel %vm1257_vm11, %v1258_v63, %v1256_v50  ;;  %v1277_v52 = vsel %vm1276_vm12, %v4010_v28, %v1275_v33  ;;  %v1781_v45 = vadd.f32 %v2424_v18, %v1406_v41  ;;  %v1268_v62 = vmul.f32 %v2631_v35, %v4026_v54 }
 0x1fc   : > { %1852 = vst [vmem:[%s3215_s21 + $0x1d0] sm:$0xff] %v1766_v7  ;;  %v1405_v51 = vmul.f32 %v1341_v44, %v1259_v36  ;;  %v1280_v2 = vsel %vm1278_vm13, %v1279_v38, %v1277_v52  ;;  %vm1269_vm14 = vcmp.eq.f32.partialorder %v4026_v54, inf  ;;  %v1272_v46 = vand.u32 2147483648, %v4026_v54 }
 0x1fd   : > { %1855 = vst [vmem:[%s3215_s21 + $0x1e8] sm:$0xff] %v1781_v45  ;;  %v1408_v30 = vmul.f32 %v1344_v12, %v1280_v2  ;;  %v1270_v34 = vsel %vm1269_vm14, %v4026_v54, %v1268_v62  ;;  %vm1271_vm15 = vcmp.eq.f32.partialorder %v4026_v54, 0.0 }
 0x1fe   : > { %v1776_v56 = vadd.f32 %v1775_v3, %v1405_v51  ;;  %v1273_v28 = vsel %vm1271_vm15, %v1272_v46, %v1270_v34 }
 0x1ff   : > { %v1791_v39 = vadd.f32 %v2427_v22, %v1408_v30  ;;  %v1407_v53 = vmul.f32 %v1343_v47, %v1273_v28 }
 0x200   : > { %1854 = vst [vmem:[%s3215_s21 + $0x1e0] sm:$0xff] %v1776_v56 }
 0x201   : > { %1857 = vst [vmem:[%s3215_s21 + $0x1f8] sm:$0xff] %v1791_v39  ;;  %v1786_v54 = vadd.f32 %v1785_v6, %v1407_v53 }
 0x203   : > { %1856 = vst [vmem:[%s3215_s21 + $0x1f0] sm:$0xff] %v1786_v54 }
 0x204   : > { %2753 = shalt.err (!%p2750_p13)
}
 0x205   : > { %s2754_s24 = scalar_lea.hbm %s4121_s6, 8192  ;;  %s2758_s13 = scalar_lea.hbm %s4172_s4, 16384 }
 0x206   : > { %p2755_p1 = scmp.ne.s32.totalorder %s4121_s6, %s2754_s24  ;;  %p2759_p7 = scmp.lt.s32.totalorder %s4121_s6, %s4172_s4 }
 0x207   : > { %p2760_p2 = scmp.lt.s32.totalorder %s2758_s13, %s2754_s24 }
 0x208   : > { %p2756_p4 = pnand %p2755_p1, %p4199_p12 }
 0x209   : > { %p2761_p8 = por %p2760_p2, %p2759_p7 }
 0x20a   : > { %p2757_p5 = pneg %p2756_p4 }
 0x20c   : > { %p2762_p6 = pnand %p2761_p8, %p2757_p5 }
 0x20e   : > { %2765 = shalt.err (!%p2762_p6)
}
 0x20f   : > { %s2821_s8 = smov 128   ;;  %s2822_s23 = smov 8  }
 0x210   : > { %2440 = dma.vmem_to_hbm [thread:$0]  (%p4199_p12), %s4123_s5, 8192, %s4121_s6, %s1859_s19, %s2821_s8, %s2821_s8, %s2822_s23  }
 0x211 PF: > { %s1887_s12 = sand.u32 1, %s2800_s15   ;;  %p4200_p0 = scmp.ne.s32.totalorder %s4185_s22, 0 }
 0x212   : > { %p4201_p10 = scmp.ge.s32.totalorder %s2812_s18, 2  ;;  %s1888_s21 = scalar_lea.sflag [#allocation4], %s1887_s12 }
 0x214   : > { %p2457_p3 = pnand %p4201_p10, %p4200_p0 }
 0x216   : > { %p2458_p11 = pneg %p2457_p3 }
 0x218   : > { %2795 = dma.done.wait (%p2458_p11), %s1888_s21, 8192  }
 0x219   : > { %2797 = vsyncadd (%p2458_p11), %s1888_s21, 4294959104  ;;  %p21_p9 = scmp.ge.s32.totalorder %s2926_s11, 4   ;;  %s4202_s15 = smov %s2804_s16 }
 0x21a   : > { %s4203_s16 = smov %s2808_s17  ;;  %s4204_s17 = smov %s2942_s20 }
 0x21b   : > { %s4205_s18 = smov %s2926_s11  ;;  %23 = sbr.rel (!%p21_p9) target bundleno = 12 (0xc), region = 102 }
 0x220   :  { %1893 = vsyncpa [#allocation3], 1 }
 0x221   :  { %1895 = vsyncpa [#allocation3 + $0x1], 1 }
 0x222   :  { %1896 = vsyncpa [#allocation6], 1 }
 0x223   :  { %1897 = vsyncpa [#allocation9], 1 }
 0x224   :  { %1899 = vsyncpa [#allocation9 + $0x1], 1 }
 0x225   :  { %1900 = vsyncpa [#allocation4], 1 }
 0x226   :  { %1902 = vsyncpa [#allocation4 + $0x1], 1 }

</bundles_post_ra>
